<compile_context>
chip_gen: v7x
topology: tpu7x:2x2x1
jax: 0.10.0
libtpu: 0.0.40
codegen_flags: <defaults>
</compile_context>

<pallas_src>
import numpy as np
import jax
import jax.numpy as jnp
from jax import lax
from jax.experimental import pallas as pl
from jax.experimental.pallas import tpu as pltpu

# ---------------- static model dimensions / packing layout ----------------
FP_MACCS = 167
FP_MACCS_PAD = 256                      # lane-aligned (2 * 128)
FP_MORGAN = 2048
FP_CAT = FP_MORGAN + FP_MACCS_PAD       # 2304 = 18 * 128

HIDDEN = 32
NFEAT = 6
NHID = 8
NHEADS = 3
HCAT = NHEADS * NHID                    # 24
COMBINED = 2 * HIDDEN + NFEAT           # 70

# row layout of the packed "small" f32 parameter block (SMALL_ROWS x 128)
ROW_W2 = 0        # rows [0,32): fc2_maccs @ cols [0,32), fc2_morgan @ cols [32,64)
ROW_WO = 32       # rows [32,56): GAT output-layer weight (HCAT, NFEAT)
ROW_WH = 56       # rows [56,62): fused per-head projection (NFEAT, HCAT)
ROW_B1M = 64      # fc1 bias (MACCS)
ROW_B2M = 65      # fc2 bias (MACCS)
ROW_B1G = 66      # fc1 bias (Morgan)
ROW_B2G = 67      # fc2 bias (Morgan)
ROW_ASH = 68      # per-head att_src, flattened (HCAT)
ROW_ADH = 69      # per-head att_dst, flattened (HCAT)
ROW_BH = 70       # per-head bias, flattened (HCAT)
ROW_ASO = 71      # output-layer att_src (NFEAT)
ROW_ADO = 72      # output-layer att_dst (NFEAT)
ROW_BO = 73       # output-layer bias (NFEAT)
ROW_WFC = 74      # final fc weight as a row (COMBINED)
ROW_BFC = 75      # final fc bias (col 0)
SMALL_ROWS = 80
SMALL_COLS = 128

_DN_T = (((1,), (1,)), ((), ()))        # contract last dims:  A (M,K) x B (N,K) -> (M,N)


# ----------------------------- fused forward kernel -----------------------------

def _attention(xp, att_src, att_dst, mask):
    """PyG GATConv(heads=1) masked-softmax aggregation.

    xp: (N, F) f32 projected node features; att_src/att_dst: (1, F) f32;
    mask: (N, N) bool with mask[i, j] == True iff edge j -> i exists (self loops included).
    Returns attn @ xp, shape (N, F), f32. Attention-dropout is identity at inference.
    """
    a_dst = jnp.sum(xp * att_dst, axis=-1, keepdims=True)                         # (N, 1) VPU+XLU
    # a_src as a lane-dense (1, N) row — no K=1 rank-1 (N,N) MXU outer product.
    a_src = lax.dot_general(att_src, xp, _DN_T, preferred_element_type=jnp.float32)  # (1, N)
    e = a_dst + a_src                                                              # VPU broadcast
    e = jnp.where(e >= 0.0, e, 0.2 * e)                                            # LeakyReLU(0.2)
    scores = jnp.where(mask, e, jnp.float32(-1e30))
    m = jnp.max(scores, axis=-1, keepdims=True)
    p = jnp.exp(scores - m)                     # masked entries underflow to exactly 0 (no 2nd select)
    denom = jnp.sum(p, axis=-1, keepdims=True)  # >= 1 thanks to self loops
    attn = p * pl.reciprocal(denom, approx=False)                                  # exact, EUP
    return jnp.dot(attn.astype(jnp.bfloat16), xp.astype(jnp.bfloat16),
                   preferred_element_type=jnp.float32)


def _fused_kernel(fp_ref, x_ref, adj_ref, pool_ref, wfp1_ref, small_ref, o_ref, hcat_ref):
    bf16 = jnp.bfloat16
    f32 = jnp.float32

    # ---------------- FPN branches (fc1 -> Dropout(id) -> ReLU -> fc2) ----------------
    fp = fp_ref[...].astype(bf16)                                   # (B, 2304) = [morgan | maccs_pad]
    fp_morgan = fp[:, :FP_MORGAN]
    fp_maccs = fp[:, FP_MORGAN:]
    w1g_t = wfp1_ref[:, :FP_MORGAN]                                 # (32, 2048) bf16, lane-dense
    w1m_t = wfp1_ref[:, FP_MORGAN:]                                 # (32, 256)  bf16

    hg = lax.dot_general(fp_morgan, w1g_t, _DN_T, preferred_element_type=f32)
    hg = jnp.maximum(hg + small_ref[ROW_B1G:ROW_B1G + 1, 0:HIDDEN], 0.0)
    hm = lax.dot_general(fp_maccs, w1m_t, _DN_T, preferred_element_type=f32)
    hm = jnp.maximum(hm + small_ref[ROW_B1M:ROW_B1M + 1, 0:HIDDEN], 0.0)

    w2m = small_ref[ROW_W2:ROW_W2 + HIDDEN, 0:HIDDEN].astype(bf16)
    w2g = small_ref[ROW_W2:ROW_W2 + HIDDEN, HIDDEN:2 * HIDDEN].astype(bf16)
    fpn_m = (jnp.dot(hm.astype(bf16), w2m, preferred_element_type=f32)
             + small_ref[ROW_B2M:ROW_B2M + 1, 0:HIDDEN])            # (B, 32)
    fpn_g = (jnp.dot(hg.astype(bf16), w2g, preferred_element_type=f32)
             + small_ref[ROW_B2G:ROW_B2G + 1, 0:HIDDEN])            # (B, 32)

    # ---------------- GAT encoder ----------------
    x = x_ref[...]                                                  # (N, NFEAT) f32
    mask = adj_ref[...] > 0.0                                       # mask[i, j]: edge j -> i
    wh = small_ref[ROW_WH:ROW_WH + NFEAT, 0:HCAT].astype(bf16)      # fused 3-head projection
    xp_all = jnp.dot(x.astype(bf16), wh, preferred_element_type=f32)  # (N, HCAT)

    ash = small_ref[ROW_ASH:ROW_ASH + 1, 0:HCAT]
    adh = small_ref[ROW_ADH:ROW_ADH + 1, 0:HCAT]
    for h in range(NHEADS):                                         # unrolled at trace time
        lo, hi = h * NHID, (h + 1) * NHID
        out_h = _attention(xp_all[:, lo:hi], ash[:, lo:hi], adh[:, lo:hi], mask)
        hcat_ref[:, lo:hi] = out_h                                   # column-slice write (no concat)
    h_cat = hcat_ref[...] + small_ref[ROW_BH:ROW_BH + 1, 0:HCAT]     # add per-head biases

    wo = small_ref[ROW_WO:ROW_WO + HCAT, 0:NFEAT].astype(bf16)
    xp_o = jnp.dot(h_cat.astype(bf16), wo, preferred_element_type=f32)   # (N, NFEAT)
    gat_nodes = (_attention(xp_o,
                            small_ref[ROW_ASO:ROW_ASO + 1, 0:NFEAT],
                            small_ref[ROW_ADO:ROW_ADO + 1, 0:NFEAT],
                            mask)
                 + small_ref[ROW_BO:ROW_BO + 1, 0:NFEAT])

    # readout: per-molecule mean via host-built pooling matrix (reproduces the reference's
    # `enumerate(mols)` offset slicing exactly)
    gat_pooled = jnp.dot(pool_ref[...].astype(bf16), gat_nodes.astype(bf16),
                         preferred_element_type=f32)                 # (B, NFEAT)

    # ---------------- final fc: VPU multiply + lane-sum (no concat, no 1-lane MXU output) -----
    wfc = small_ref[ROW_WFC:ROW_WFC + 1, :]
    out = (jnp.sum(fpn_m * wfc[:, 0:HIDDEN], axis=-1, keepdims=True)
           + jnp.sum(fpn_g * wfc[:, HIDDEN:2 * HIDDEN], axis=-1, keepdims=True)
           + jnp.sum(gat_pooled * wfc[:, 2 * HIDDEN:COMBINED], axis=-1, keepdims=True)
           + small_ref[ROW_BFC:ROW_BFC + 1, 0:1])
    o_ref[...] = out


# ----------------------------- wrapper -----------------------------------
# Everything fits trivially in VMEM at these sizes -> one single-block, grid-less pallas_call.
# At production batch sizes, add a molecule-block grid axis (dimension_semantics=("parallel",))
# and flash-style KV tiling of the (N, N) attention for v7x's 64 MiB VMEM.

@jax.jit
def fpgnn_forward(fp_cat, node_feats, adj, pool, wfp1, small):
    num_mols = fp_cat.shape[0]
    n_total = node_feats.shape[0]
    return pl.pallas_call(
        _fused_kernel,
        out_shape=jax.ShapeDtypeStruct((num_mols, 1), jnp.float32),
        scratch_shapes=[pltpu.VMEM((n_total, HCAT), jnp.float32)],
    )(fp_cat, node_feats, adj, pool, wfp1, small)


# ----------------------------- parameter init + packing ---------------------------------

def init_packed_params(key):
    """Build the two packed parameter blocks: wfp1 (bf16, lane-dense fc1 weights) and the
    (SMALL_ROWS, 128) f32 block holding every other weight / bias / attention vector."""
    ks = jax.random.split(key, 12)

    def unif(k, shape, fan_in):
        b = 1.0 / np.sqrt(fan_in)
        return np.asarray(jax.random.uniform(k, shape, jnp.float32, -b, b))

    # FPN (MACCS): weights stored transposed (out, in) for lane-dense packing
    w1m = unif(ks[0], (HIDDEN, FP_MACCS), FP_MACCS)
    b1m = unif(ks[1], (HIDDEN,), FP_MACCS)
    w2m = unif(ks[2], (HIDDEN, HIDDEN), HIDDEN)          # (in, out)
    b2m = unif(ks[3], (HIDDEN,), HIDDEN)
    # FPN (Morgan)
    w1g = unif(ks[4], (HIDDEN, FP_MORGAN), FP_MORGAN)
    b1g = unif(ks[5], (HIDDEN,), FP_MORGAN)
    w2g = unif(ks[6], (HIDDEN, HIDDEN), HIDDEN)
    b2g = unif(ks[7], (HIDDEN,), HIDDEN)
    # GAT heads (fused projection) + attention vectors + biases
    kh = jax.random.split(ks[8], 4)
    wh = np.asarray(jax.random.normal(kh[0], (NFEAT, HCAT), jnp.float32)) / np.sqrt(NFEAT)
    ash = np.asarray(jax.random.normal(kh[1], (HCAT,), jnp.float32)) * 0.1
    adh = np.asarray(jax.random.normal(kh[2], (HCAT,), jnp.float32)) * 0.1
    bh = np.zeros((HCAT,), np.float32)
    # GAT output layer
    ko = jax.random.split(ks[9], 4)
    wo = np.asarray(jax.random.normal(ko[0], (HCAT, NFEAT), jnp.float32)) / np.sqrt(HCAT)
    aso = np.asarray(jax.random.normal(ko[1], (NFEAT,), jnp.float32)) * 0.1
    ado = np.asarray(jax.random.normal(ko[2], (NFEAT,), jnp.float32)) * 0.1
    bo = np.zeros((NFEAT,), np.float32)
    # final fc
    wfc = unif(ks[10], (COMBINED,), COMBINED)
    bfc = unif(ks[11], (1,), COMBINED)

    # ---- pack fc1 weights: [morgan_fc1^T (32,2048) | maccs_fc1^T zero-padded to (32,256)] ----
    wfp1 = np.zeros((HIDDEN, FP_CAT), np.float32)
    wfp1[:, :FP_MORGAN] = w1g
    wfp1[:, FP_MORGAN:FP_MORGAN + FP_MACCS] = w1m
    wfp1 = jnp.asarray(wfp1, jnp.bfloat16)

    # ---- pack everything small into one (80, 128) f32 block ----
    small = np.zeros((SMALL_ROWS, SMALL_COLS), np.float32)
    small[ROW_W2:ROW_W2 + HIDDEN, 0:HIDDEN] = w2m
    small[ROW_W2:ROW_W2 + HIDDEN, HIDDEN:2 * HIDDEN] = w2g
    small[ROW_WO:ROW_WO + HCAT, 0:NFEAT] = wo
    small[ROW_WH:ROW_WH + NFEAT, 0:HCAT] = wh
    small[ROW_B1M, 0:HIDDEN] = b1m
    small[ROW_B2M, 0:HIDDEN] = b2m
    small[ROW_B1G, 0:HIDDEN] = b1g
    small[ROW_B2G, 0:HIDDEN] = b2g
    small[ROW_ASH, 0:HCAT] = ash
    small[ROW_ADH, 0:HCAT] = adh
    small[ROW_BH, 0:HCAT] = bh
    small[ROW_ASO, 0:NFEAT] = aso
    small[ROW_ADO, 0:NFEAT] = ado
    small[ROW_BO, 0:NFEAT] = bo
    small[ROW_WFC, 0:COMBINED] = wfc
    small[ROW_BFC, 0] = bfc[0]
    small = jnp.asarray(small)
    return wfp1, small


# ----------------------------- main ----------------------------------------

if __name__ == "__main__":
    key = jax.random.PRNGKey(0)
    k_fp1, k_fp2, k_nodes, k_params = jax.random.split(key, 4)

    num_mols = 2
    node_counts = [5, 7]
    n_total = sum(node_counts)

    # TODO(synk): RDKit SMILES -> MACCS/Morgan fingerprints and mol_to_graph graph construction
    # are host-side chemistry with no TPU equivalent; deterministic synthetic stand-ins are used.
    fp_maccs = np.asarray(jax.random.bernoulli(k_fp1, 0.3, (num_mols, FP_MACCS)), np.float32)
    fp_morgan = np.asarray(jax.random.bernoulli(k_fp2, 0.05, (num_mols, FP_MORGAN)), np.float32)
    # one lane-dense fingerprint operand: [morgan (2048) | maccs zero-padded to 256]
    fp_cat = np.zeros((num_mols, FP_CAT), np.float32)
    fp_cat[:, :FP_MORGAN] = fp_morgan
    fp_cat[:, FP_MORGAN:FP_MORGAN + FP_MACCS] = fp_maccs
    fp_cat = jnp.asarray(fp_cat)

    node_feats = jax.random.normal(k_nodes, (n_total, NFEAT), jnp.float32)

    # chain bonds within each molecule, both directions (as mol_to_graph does)
    edges = []
    off = 0
    for n in node_counts:
        for a in range(n - 1):
            edges.append((off + a, off + a + 1))
            edges.append((off + a + 1, off + a))
        off += n

    # Static graph structure built ONCE on the host (outside the jitted forward):
    #  adj[dst, src] = 1 for every directed edge, plus PyG's default self loops.
    adj_np = np.eye(n_total, dtype=np.float32)
    for s, d in edges:
        adj_np[d, s] = 1.0
    #  readout matrix reproduces the reference's `enumerate(mols)` offset semantics exactly.
    pool_np = np.zeros((num_mols, n_total), np.float32)
    for i, n in enumerate(node_counts):
        pool_np[i, i:i + n] = 1.0 / n
    adj = jnp.asarray(adj_np)
    pool = jnp.asarray(pool_np)

    wfp1, small = init_packed_params(k_params)

    out = fpgnn_forward(fp_cat, node_feats, adj, pool, wfp1, small)
    jax.block_until_ready(out)
    assert out.shape == (num_mols, 1) and out.dtype == jnp.float32
    assert bool(jnp.all(jnp.isfinite(out)))
    print("KERNEL_OK")
</pallas_src>

<mosaic_0001>
module attributes {stable_mosaic.version = 11 : i64} {
  func.func @_fused_kernel(%arg0: memref<2x2304xf32, #tpu.memory_space<vmem>>, %arg1: memref<12x6xf32, #tpu.memory_space<vmem>>, %arg2: memref<12x12xf32, #tpu.memory_space<vmem>>, %arg3: memref<2x12xf32, #tpu.memory_space<vmem>>, %arg4: memref<32x2304xbf16, #tpu.memory_space<vmem>>, %arg5: memref<80x128xf32, #tpu.memory_space<vmem>>, %arg6: memref<2x1xf32, #tpu.memory_space<vmem>>, %arg7: memref<12x24xf32, #tpu.memory_space<vmem>>) attributes {dimension_semantics = [], scalar_prefetch = 0 : i64, scratch_operands = 1 : i64, tpu.core_type = #tpu.core_type<tc>} {
    %c0 = arith.constant 0 : index
    %c0_0 = arith.constant 0 : index
    %0 = vector.load %arg0[%c0, %c0_0] : memref<2x2304xf32, #tpu.memory_space<vmem>>, vector<2x2304xf32>
    %1 = arith.truncf %0 : vector<2x2304xf32> to vector<2x2304xbf16>
    %2 = vector.extract_strided_slice %1 {offsets = [0, 0], sizes = [2, 2048], strides = [1, 1]} : vector<2x2304xbf16> to vector<2x2048xbf16>
    %3 = vector.extract_strided_slice %1 {offsets = [0, 2048], sizes = [2, 256], strides = [1, 1]} : vector<2x2304xbf16> to vector<2x256xbf16>
    %c0_1 = arith.constant 0 : index
    %c0_2 = arith.constant 0 : index
    %4 = vector.load %arg4[%c0_1, %c0_2] : memref<32x2304xbf16, #tpu.memory_space<vmem>>, vector<32x2048xbf16>
    %c0_3 = arith.constant 0 : index
    %c2048 = arith.constant 2048 : index
    %5 = vector.load %arg4[%c0_3, %c2048] : memref<32x2304xbf16, #tpu.memory_space<vmem>>, vector<32x256xbf16>
    %cst = arith.constant dense<0.000000e+00> : vector<2x32xf32>
    %6 = tpu.matmul %2, %4, %cst {dimension_numbers = #tpu.dot_dimension_numbers<[1], [1], [0], [0], [0, 0, 1, 0], [], []>} : vector<2x2048xbf16>, vector<32x2048xbf16>, vector<2x32xf32> -> vector<2x32xf32>
    %c66 = arith.constant 66 : index
    %c0_4 = arith.constant 0 : index
    %7 = vector.load %arg5[%c66, %c0_4] : memref<80x128xf32, #tpu.memory_space<vmem>>, vector<1x32xf32>
    %8 = vector.broadcast %7 : vector<1x32xf32> to vector<2x32xf32>
    %9 = arith.addf %6, %8 : vector<2x32xf32>
    %cst_5 = arith.constant 0.000000e+00 : f32
    %10 = vector.broadcast %cst_5 : f32 to vector<2x32xf32>
    %11 = arith.maximumf %9, %10 : vector<2x32xf32>
    %cst_6 = arith.constant dense<0.000000e+00> : vector<2x32xf32>
    %12 = tpu.matmul %3, %5, %cst_6 {dimension_numbers = #tpu.dot_dimension_numbers<[1], [1], [0], [0], [0, 0, 1, 0], [], []>} : vector<2x256xbf16>, vector<32x256xbf16>, vector<2x32xf32> -> vector<2x32xf32>
    %c64 = arith.constant 64 : index
    %c0_7 = arith.constant 0 : index
    %13 = vector.load %arg5[%c64, %c0_7] : memref<80x128xf32, #tpu.memory_space<vmem>>, vector<1x32xf32>
    %14 = vector.broadcast %13 : vector<1x32xf32> to vector<2x32xf32>
    %15 = arith.addf %12, %14 : vector<2x32xf32>
    %cst_8 = arith.constant 0.000000e+00 : f32
    %16 = vector.broadcast %cst_8 : f32 to vector<2x32xf32>
    %17 = arith.maximumf %15, %16 : vector<2x32xf32>
    %c0_9 = arith.constant 0 : index
    %c0_10 = arith.constant 0 : index
    %18 = vector.load %arg5[%c0_9, %c0_10] : memref<80x128xf32, #tpu.memory_space<vmem>>, vector<32x32xf32>
    %19 = arith.truncf %18 : vector<32x32xf32> to vector<32x32xbf16>
    %c0_11 = arith.constant 0 : index
    %c32 = arith.constant 32 : index
    %20 = vector.load %arg5[%c0_11, %c32] : memref<80x128xf32, #tpu.memory_space<vmem>>, vector<32x32xf32>
    %21 = arith.truncf %20 : vector<32x32xf32> to vector<32x32xbf16>
    %22 = arith.truncf %17 : vector<2x32xf32> to vector<2x32xbf16>
    %cst_12 = arith.constant dense<0.000000e+00> : vector<2x32xf32>
    %23 = tpu.matmul %22, %19, %cst_12 {dimension_numbers = #tpu.dot_dimension_numbers<[1], [0], [0], [1], [0, 0, 1, 1], [], []>} : vector<2x32xbf16>, vector<32x32xbf16>, vector<2x32xf32> -> vector<2x32xf32>
    %c65 = arith.constant 65 : index
    %c0_13 = arith.constant 0 : index
    %24 = vector.load %arg5[%c65, %c0_13] : memref<80x128xf32, #tpu.memory_space<vmem>>, vector<1x32xf32>
    %25 = vector.broadcast %24 : vector<1x32xf32> to vector<2x32xf32>
    %26 = arith.addf %23, %25 : vector<2x32xf32>
    %27 = arith.truncf %11 : vector<2x32xf32> to vector<2x32xbf16>
    %cst_14 = arith.constant dense<0.000000e+00> : vector<2x32xf32>
    %28 = tpu.matmul %27, %21, %cst_14 {dimension_numbers = #tpu.dot_dimension_numbers<[1], [0], [0], [1], [0, 0, 1, 1], [], []>} : vector<2x32xbf16>, vector<32x32xbf16>, vector<2x32xf32> -> vector<2x32xf32>
    %c67 = arith.constant 67 : index
    %c0_15 = arith.constant 0 : index
    %29 = vector.load %arg5[%c67, %c0_15] : memref<80x128xf32, #tpu.memory_space<vmem>>, vector<1x32xf32>
    %30 = vector.broadcast %29 : vector<1x32xf32> to vector<2x32xf32>
    %31 = arith.addf %28, %30 : vector<2x32xf32>
    %c0_16 = arith.constant 0 : index
    %c0_17 = arith.constant 0 : index
    %32 = vector.load %arg1[%c0_16, %c0_17] : memref<12x6xf32, #tpu.memory_space<vmem>>, vector<12x6xf32>
    %c0_18 = arith.constant 0 : index
    %c0_19 = arith.constant 0 : index
    %33 = vector.load %arg2[%c0_18, %c0_19] : memref<12x12xf32, #tpu.memory_space<vmem>>, vector<12x12xf32>
    %cst_20 = arith.constant 0.000000e+00 : f32
    %34 = vector.broadcast %cst_20 : f32 to vector<12x12xf32>
    %35 = arith.cmpf ogt, %33, %34 : vector<12x12xf32>
    %c56 = arith.constant 56 : index
    %c0_21 = arith.constant 0 : index
    %36 = vector.load %arg5[%c56, %c0_21] : memref<80x128xf32, #tpu.memory_space<vmem>>, vector<6x24xf32>
    %37 = arith.truncf %36 : vector<6x24xf32> to vector<6x24xbf16>
    %38 = arith.truncf %32 : vector<12x6xf32> to vector<12x6xbf16>
    %cst_22 = arith.constant dense<0.000000e+00> : vector<12x24xf32>
    %39 = tpu.matmul %38, %37, %cst_22 {dimension_numbers = #tpu.dot_dimension_numbers<[1], [0], [0], [1], [0, 0, 1, 1], [], []>} : vector<12x6xbf16>, vector<6x24xbf16>, vector<12x24xf32> -> vector<12x24xf32>
    %c68 = arith.constant 68 : index
    %c0_23 = arith.constant 0 : index
    %40 = vector.load %arg5[%c68, %c0_23] : memref<80x128xf32, #tpu.memory_space<vmem>>, vector<1x24xf32>
    %c69 = arith.constant 69 : index
    %c0_24 = arith.constant 0 : index
    %41 = vector.load %arg5[%c69, %c0_24] : memref<80x128xf32, #tpu.memory_space<vmem>>, vector<1x24xf32>
    %42 = vector.extract_strided_slice %39 {offsets = [0, 0], sizes = [12, 8], strides = [1, 1]} : vector<12x24xf32> to vector<12x8xf32>
    %43 = vector.extract_strided_slice %40 {offsets = [0, 0], sizes = [1, 8], strides = [1, 1]} : vector<1x24xf32> to vector<1x8xf32>
    %44 = vector.extract_strided_slice %41 {offsets = [0, 0], sizes = [1, 8], strides = [1, 1]} : vector<1x24xf32> to vector<1x8xf32>
    %45 = vector.broadcast %44 : vector<1x8xf32> to vector<12x8xf32>
    %46 = arith.mulf %42, %45 : vector<12x8xf32>
    %cst_25 = arith.constant dense<0.000000e+00> : vector<12xf32>
    %47 = vector.multi_reduction <add>, %46, %cst_25 [1] : vector<12x8xf32> to vector<12xf32>
    %48 = vector.shape_cast %47 : vector<12xf32> to vector<12x1xf32>
    %cst_26 = arith.constant dense<0.000000e+00> : vector<1x12xf32>
    %49 = tpu.matmul %43, %42, %cst_26 {dimension_numbers = #tpu.dot_dimension_numbers<[1], [1], [0], [0], [0, 0, 1, 0], [], []>} : vector<1x8xf32>, vector<12x8xf32>, vector<1x12xf32> -> vector<1x12xf32>
    %50 = vector.broadcast %48 : vector<12x1xf32> to vector<12x12xf32>
    %51 = vector.broadcast %49 : vector<1x12xf32> to vector<12x12xf32>
    %52 = arith.addf %50, %51 : vector<12x12xf32>
    %cst_27 = arith.constant 0.000000e+00 : f32
    %53 = vector.broadcast %cst_27 : f32 to vector<12x12xf32>
    %54 = arith.cmpf oge, %52, %53 : vector<12x12xf32>
    %cst_28 = arith.constant 2.000000e-01 : f32
    %55 = vector.broadcast %cst_28 : f32 to vector<12x12xf32>
    %56 = arith.mulf %55, %52 : vector<12x12xf32>
    %57 = arith.select %54, %52, %56 : vector<12x12xi1>, vector<12x12xf32>
    %cst_29 = arith.constant -1.000000e+30 : f32
    %58 = vector.broadcast %cst_29 : f32 to vector<12x12xf32>
    %59 = arith.select %35, %57, %58 : vector<12x12xi1>, vector<12x12xf32>
    %cst_30 = arith.constant dense<0xFF800000> : vector<12xf32>
    %60 = vector.multi_reduction <maximumf>, %59, %cst_30 [1] : vector<12x12xf32> to vector<12xf32>
    %61 = vector.shape_cast %60 : vector<12xf32> to vector<12x1xf32>
    %62 = vector.broadcast %61 : vector<12x1xf32> to vector<12x12xf32>
    %63 = arith.subf %59, %62 : vector<12x12xf32>
    %64 = math.exp %63 : vector<12x12xf32>
    %cst_31 = arith.constant dense<0.000000e+00> : vector<12xf32>
    %65 = vector.multi_reduction <add>, %64, %cst_31 [1] : vector<12x12xf32> to vector<12xf32>
    %66 = vector.shape_cast %65 : vector<12xf32> to vector<12x1xf32>
    %67 = tpu.reciprocal %66 : vector<12x1xf32> -> vector<12x1xf32>
    %68 = vector.broadcast %67 : vector<12x1xf32> to vector<12x12xf32>
    %69 = arith.mulf %64, %68 : vector<12x12xf32>
    %70 = arith.truncf %69 : vector<12x12xf32> to vector<12x12xbf16>
    %71 = arith.truncf %42 : vector<12x8xf32> to vector<12x8xbf16>
    %cst_32 = arith.constant dense<0.000000e+00> : vector<12x8xf32>
    %72 = tpu.matmul %70, %71, %cst_32 {dimension_numbers = #tpu.dot_dimension_numbers<[1], [0], [0], [1], [0, 0, 1, 1], [], []>} : vector<12x12xbf16>, vector<12x8xbf16>, vector<12x8xf32> -> vector<12x8xf32>
    %c0_33 = arith.constant 0 : index
    %c0_34 = arith.constant 0 : index
    %73 = vector.load %arg7[%c0_33, %c0_34] : memref<12x24xf32, #tpu.memory_space<vmem>>, vector<12x8xf32>
    tpu.vector_store %arg7[%c0_33, %c0_34], %72 {strides = array<i32>} : memref<12x24xf32, #tpu.memory_space<vmem>>, vector<12x8xf32>,
    %74 = vector.extract_strided_slice %39 {offsets = [0, 8], sizes = [12, 8], strides = [1, 1]} : vector<12x24xf32> to vector<12x8xf32>
    %75 = vector.extract_strided_slice %40 {offsets = [0, 8], sizes = [1, 8], strides = [1, 1]} : vector<1x24xf32> to vector<1x8xf32>
    %76 = vector.extract_strided_slice %41 {offsets = [0, 8], sizes = [1, 8], strides = [1, 1]} : vector<1x24xf32> to vector<1x8xf32>
    %77 = vector.broadcast %76 : vector<1x8xf32> to vector<12x8xf32>
    %78 = arith.mulf %74, %77 : vector<12x8xf32>
    %cst_35 = arith.constant dense<0.000000e+00> : vector<12xf32>
    %79 = vector.multi_reduction <add>, %78, %cst_35 [1] : vector<12x8xf32> to vector<12xf32>
    %80 = vector.shape_cast %79 : vector<12xf32> to vector<12x1xf32>
    %cst_36 = arith.constant dense<0.000000e+00> : vector<1x12xf32>
    %81 = tpu.matmul %75, %74, %cst_36 {dimension_numbers = #tpu.dot_dimension_numbers<[1], [1], [0], [0], [0, 0, 1, 0], [], []>} : vector<1x8xf32>, vector<12x8xf32>, vector<1x12xf32> -> vector<1x12xf32>
    %82 = vector.broadcast %80 : vector<12x1xf32> to vector<12x12xf32>
    %83 = vector.broadcast %81 : vector<1x12xf32> to vector<12x12xf32>
    %84 = arith.addf %82, %83 : vector<12x12xf32>
    %cst_37 = arith.constant 0.000000e+00 : f32
    %85 = vector.broadcast %cst_37 : f32 to vector<12x12xf32>
    %86 = arith.cmpf oge, %84, %85 : vector<12x12xf32>
    %cst_38 = arith.constant 2.000000e-01 : f32
    %87 = vector.broadcast %cst_38 : f32 to vector<12x12xf32>
    %88 = arith.mulf %87, %84 : vector<12x12xf32>
    %89 = arith.select %86, %84, %88 : vector<12x12xi1>, vector<12x12xf32>
    %cst_39 = arith.constant -1.000000e+30 : f32
    %90 = vector.broadcast %cst_39 : f32 to vector<12x12xf32>
    %91 = arith.select %35, %89, %90 : vector<12x12xi1>, vector<12x12xf32>
    %cst_40 = arith.constant dense<0xFF800000> : vector<12xf32>
    %92 = vector.multi_reduction <maximumf>, %91, %cst_40 [1] : vector<12x12xf32> to vector<12xf32>
    %93 = vector.shape_cast %92 : vector<12xf32> to vector<12x1xf32>
    %94 = vector.broadcast %93 : vector<12x1xf32> to vector<12x12xf32>
    %95 = arith.subf %91, %94 : vector<12x12xf32>
    %96 = math.exp %95 : vector<12x12xf32>
    %cst_41 = arith.constant dense<0.000000e+00> : vector<12xf32>
    %97 = vector.multi_reduction <add>, %96, %cst_41 [1] : vector<12x12xf32> to vector<12xf32>
    %98 = vector.shape_cast %97 : vector<12xf32> to vector<12x1xf32>
    %99 = tpu.reciprocal %98 : vector<12x1xf32> -> vector<12x1xf32>
    %100 = vector.broadcast %99 : vector<12x1xf32> to vector<12x12xf32>
    %101 = arith.mulf %96, %100 : vector<12x12xf32>
    %102 = arith.truncf %101 : vector<12x12xf32> to vector<12x12xbf16>
    %103 = arith.truncf %74 : vector<12x8xf32> to vector<12x8xbf16>
    %cst_42 = arith.constant dense<0.000000e+00> : vector<12x8xf32>
    %104 = tpu.matmul %102, %103, %cst_42 {dimension_numbers = #tpu.dot_dimension_numbers<[1], [0], [0], [1], [0, 0, 1, 1], [], []>} : vector<12x12xbf16>, vector<12x8xbf16>, vector<12x8xf32> -> vector<12x8xf32>
    %c0_43 = arith.constant 0 : index
    %c8 = arith.constant 8 : index
    %105 = vector.load %arg7[%c0_43, %c8] : memref<12x24xf32, #tpu.memory_space<vmem>>, vector<12x8xf32>
    tpu.vector_store %arg7[%c0_43, %c8], %104 {strides = array<i32>} : memref<12x24xf32, #tpu.memory_space<vmem>>, vector<12x8xf32>,
    %106 = vector.extract_strided_slice %39 {offsets = [0, 16], sizes = [12, 8], strides = [1, 1]} : vector<12x24xf32> to vector<12x8xf32>
    %107 = vector.extract_strided_slice %40 {offsets = [0, 16], sizes = [1, 8], strides = [1, 1]} : vector<1x24xf32> to vector<1x8xf32>
    %108 = vector.extract_strided_slice %41 {offsets = [0, 16], sizes = [1, 8], strides = [1, 1]} : vector<1x24xf32> to vector<1x8xf32>
    %109 = vector.broadcast %108 : vector<1x8xf32> to vector<12x8xf32>
    %110 = arith.mulf %106, %109 : vector<12x8xf32>
    %cst_44 = arith.constant dense<0.000000e+00> : vector<12xf32>
    %111 = vector.multi_reduction <add>, %110, %cst_44 [1] : vector<12x8xf32> to vector<12xf32>
    %112 = vector.shape_cast %111 : vector<12xf32> to vector<12x1xf32>
    %cst_45 = arith.constant dense<0.000000e+00> : vector<1x12xf32>
    %113 = tpu.matmul %107, %106, %cst_45 {dimension_numbers = #tpu.dot_dimension_numbers<[1], [1], [0], [0], [0, 0, 1, 0], [], []>} : vector<1x8xf32>, vector<12x8xf32>, vector<1x12xf32> -> vector<1x12xf32>
    %114 = vector.broadcast %112 : vector<12x1xf32> to vector<12x12xf32>
    %115 = vector.broadcast %113 : vector<1x12xf32> to vector<12x12xf32>
    %116 = arith.addf %114, %115 : vector<12x12xf32>
    %cst_46 = arith.constant 0.000000e+00 : f32
    %117 = vector.broadcast %cst_46 : f32 to vector<12x12xf32>
    %118 = arith.cmpf oge, %116, %117 : vector<12x12xf32>
    %cst_47 = arith.constant 2.000000e-01 : f32
    %119 = vector.broadcast %cst_47 : f32 to vector<12x12xf32>
    %120 = arith.mulf %119, %116 : vector<12x12xf32>
    %121 = arith.select %118, %116, %120 : vector<12x12xi1>, vector<12x12xf32>
    %cst_48 = arith.constant -1.000000e+30 : f32
    %122 = vector.broadcast %cst_48 : f32 to vector<12x12xf32>
    %123 = arith.select %35, %121, %122 : vector<12x12xi1>, vector<12x12xf32>
    %cst_49 = arith.constant dense<0xFF800000> : vector<12xf32>
    %124 = vector.multi_reduction <maximumf>, %123, %cst_49 [1] : vector<12x12xf32> to vector<12xf32>
    %125 = vector.shape_cast %124 : vector<12xf32> to vector<12x1xf32>
    %126 = vector.broadcast %125 : vector<12x1xf32> to vector<12x12xf32>
    %127 = arith.subf %123, %126 : vector<12x12xf32>
    %128 = math.exp %127 : vector<12x12xf32>
    %cst_50 = arith.constant dense<0.000000e+00> : vector<12xf32>
    %129 = vector.multi_reduction <add>, %128, %cst_50 [1] : vector<12x12xf32> to vector<12xf32>
    %130 = vector.shape_cast %129 : vector<12xf32> to vector<12x1xf32>
    %131 = tpu.reciprocal %130 : vector<12x1xf32> -> vector<12x1xf32>
    %132 = vector.broadcast %131 : vector<12x1xf32> to vector<12x12xf32>
    %133 = arith.mulf %128, %132 : vector<12x12xf32>
    %134 = arith.truncf %133 : vector<12x12xf32> to vector<12x12xbf16>
    %135 = arith.truncf %106 : vector<12x8xf32> to vector<12x8xbf16>
    %cst_51 = arith.constant dense<0.000000e+00> : vector<12x8xf32>
    %136 = tpu.matmul %134, %135, %cst_51 {dimension_numbers = #tpu.dot_dimension_numbers<[1], [0], [0], [1], [0, 0, 1, 1], [], []>} : vector<12x12xbf16>, vector<12x8xbf16>, vector<12x8xf32> -> vector<12x8xf32>
    %c0_52 = arith.constant 0 : index
    %c16 = arith.constant 16 : index
    %137 = vector.load %arg7[%c0_52, %c16] : memref<12x24xf32, #tpu.memory_space<vmem>>, vector<12x8xf32>
    tpu.vector_store %arg7[%c0_52, %c16], %136 {strides = array<i32>} : memref<12x24xf32, #tpu.memory_space<vmem>>, vector<12x8xf32>,
    %c0_53 = arith.constant 0 : index
    %c0_54 = arith.constant 0 : index
    %138 = vector.load %arg7[%c0_53, %c0_54] : memref<12x24xf32, #tpu.memory_space<vmem>>, vector<12x24xf32>
    %c70 = arith.constant 70 : index
    %c0_55 = arith.constant 0 : index
    %139 = vector.load %arg5[%c70, %c0_55] : memref<80x128xf32, #tpu.memory_space<vmem>>, vector<1x24xf32>
    %140 = vector.broadcast %139 : vector<1x24xf32> to vector<12x24xf32>
    %141 = arith.addf %138, %140 : vector<12x24xf32>
    %c32_56 = arith.constant 32 : index
    %c0_57 = arith.constant 0 : index
    %142 = vector.load %arg5[%c32_56, %c0_57] : memref<80x128xf32, #tpu.memory_space<vmem>>, vector<24x6xf32>
    %143 = arith.truncf %142 : vector<24x6xf32> to vector<24x6xbf16>
    %144 = arith.truncf %141 : vector<12x24xf32> to vector<12x24xbf16>
    %cst_58 = arith.constant dense<0.000000e+00> : vector<12x6xf32>
    %145 = tpu.matmul %144, %143, %cst_58 {dimension_numbers = #tpu.dot_dimension_numbers<[1], [0], [0], [1], [0, 0, 1, 1], [], []>} : vector<12x24xbf16>, vector<24x6xbf16>, vector<12x6xf32> -> vector<12x6xf32>
    %c71 = arith.constant 71 : index
    %c0_59 = arith.constant 0 : index
    %146 = vector.load %arg5[%c71, %c0_59] : memref<80x128xf32, #tpu.memory_space<vmem>>, vector<1x6xf32>
    %c72 = arith.constant 72 : index
    %c0_60 = arith.constant 0 : index
    %147 = vector.load %arg5[%c72, %c0_60] : memref<80x128xf32, #tpu.memory_space<vmem>>, vector<1x6xf32>
    %148 = vector.broadcast %147 : vector<1x6xf32> to vector<12x6xf32>
    %149 = arith.mulf %145, %148 : vector<12x6xf32>
    %cst_61 = arith.constant dense<0.000000e+00> : vector<12xf32>
    %150 = vector.multi_reduction <add>, %149, %cst_61 [1] : vector<12x6xf32> to vector<12xf32>
    %151 = vector.shape_cast %150 : vector<12xf32> to vector<12x1xf32>
    %cst_62 = arith.constant dense<0.000000e+00> : vector<1x12xf32>
    %152 = tpu.matmul %146, %145, %cst_62 {dimension_numbers = #tpu.dot_dimension_numbers<[1], [1], [0], [0], [0, 0, 1, 0], [], []>} : vector<1x6xf32>, vector<12x6xf32>, vector<1x12xf32> -> vector<1x12xf32>
    %153 = vector.broadcast %151 : vector<12x1xf32> to vector<12x12xf32>
    %154 = vector.broadcast %152 : vector<1x12xf32> to vector<12x12xf32>
    %155 = arith.addf %153, %154 : vector<12x12xf32>
    %cst_63 = arith.constant 0.000000e+00 : f32
    %156 = vector.broadcast %cst_63 : f32 to vector<12x12xf32>
    %157 = arith.cmpf oge, %155, %156 : vector<12x12xf32>
    %cst_64 = arith.constant 2.000000e-01 : f32
    %158 = vector.broadcast %cst_64 : f32 to vector<12x12xf32>
    %159 = arith.mulf %158, %155 : vector<12x12xf32>
    %160 = arith.select %157, %155, %159 : vector<12x12xi1>, vector<12x12xf32>
    %cst_65 = arith.constant -1.000000e+30 : f32
    %161 = vector.broadcast %cst_65 : f32 to vector<12x12xf32>
    %162 = arith.select %35, %160, %161 : vector<12x12xi1>, vector<12x12xf32>
    %cst_66 = arith.constant dense<0xFF800000> : vector<12xf32>
    %163 = vector.multi_reduction <maximumf>, %162, %cst_66 [1] : vector<12x12xf32> to vector<12xf32>
    %164 = vector.shape_cast %163 : vector<12xf32> to vector<12x1xf32>
    %165 = vector.broadcast %164 : vector<12x1xf32> to vector<12x12xf32>
    %166 = arith.subf %162, %165 : vector<12x12xf32>
    %167 = math.exp %166 : vector<12x12xf32>
    %cst_67 = arith.constant dense<0.000000e+00> : vector<12xf32>
    %168 = vector.multi_reduction <add>, %167, %cst_67 [1] : vector<12x12xf32> to vector<12xf32>
    %169 = vector.shape_cast %168 : vector<12xf32> to vector<12x1xf32>
    %170 = tpu.reciprocal %169 : vector<12x1xf32> -> vector<12x1xf32>
    %171 = vector.broadcast %170 : vector<12x1xf32> to vector<12x12xf32>
    %172 = arith.mulf %167, %171 : vector<12x12xf32>
    %173 = arith.truncf %172 : vector<12x12xf32> to vector<12x12xbf16>
    %174 = arith.truncf %145 : vector<12x6xf32> to vector<12x6xbf16>
    %cst_68 = arith.constant dense<0.000000e+00> : vector<12x6xf32>
    %175 = tpu.matmul %173, %174, %cst_68 {dimension_numbers = #tpu.dot_dimension_numbers<[1], [0], [0], [1], [0, 0, 1, 1], [], []>} : vector<12x12xbf16>, vector<12x6xbf16>, vector<12x6xf32> -> vector<12x6xf32>
    %c73 = arith.constant 73 : index
    %c0_69 = arith.constant 0 : index
    %176 = vector.load %arg5[%c73, %c0_69] : memref<80x128xf32, #tpu.memory_space<vmem>>, vector<1x6xf32>
    %177 = vector.broadcast %176 : vector<1x6xf32> to vector<12x6xf32>
    %178 = arith.addf %175, %177 : vector<12x6xf32>
    %c0_70 = arith.constant 0 : index
    %c0_71 = arith.constant 0 : index
    %179 = vector.load %arg3[%c0_70, %c0_71] : memref<2x12xf32, #tpu.memory_space<vmem>>, vector<2x12xf32>
    %180 = arith.truncf %179 : vector<2x12xf32> to vector<2x12xbf16>
    %181 = arith.truncf %178 : vector<12x6xf32> to vector<12x6xbf16>
    %cst_72 = arith.constant dense<0.000000e+00> : vector<2x6xf32>
    %182 = tpu.matmul %180, %181, %cst_72 {dimension_numbers = #tpu.dot_dimension_numbers<[1], [0], [0], [1], [0, 0, 1, 1], [], []>} : vector<2x12xbf16>, vector<12x6xbf16>, vector<2x6xf32> -> vector<2x6xf32>
    %c74 = arith.constant 74 : index
    %c0_73 = arith.constant 0 : index
    %183 = vector.load %arg5[%c74, %c0_73] : memref<80x128xf32, #tpu.memory_space<vmem>>, vector<1x128xf32>
    %184 = vector.extract_strided_slice %183 {offsets = [0, 0], sizes = [1, 32], strides = [1, 1]} : vector<1x128xf32> to vector<1x32xf32>
    %185 = vector.broadcast %184 : vector<1x32xf32> to vector<2x32xf32>
    %186 = arith.mulf %26, %185 : vector<2x32xf32>
    %cst_74 = arith.constant dense<0.000000e+00> : vector<2xf32>
    %187 = vector.multi_reduction <add>, %186, %cst_74 [1] : vector<2x32xf32> to vector<2xf32>
    %188 = vector.shape_cast %187 : vector<2xf32> to vector<2x1xf32>
    %189 = vector.extract_strided_slice %183 {offsets = [0, 32], sizes = [1, 32], strides = [1, 1]} : vector<1x128xf32> to vector<1x32xf32>
    %190 = vector.broadcast %189 : vector<1x32xf32> to vector<2x32xf32>
    %191 = arith.mulf %31, %190 : vector<2x32xf32>
    %cst_75 = arith.constant dense<0.000000e+00> : vector<2xf32>
    %192 = vector.multi_reduction <add>, %191, %cst_75 [1] : vector<2x32xf32> to vector<2xf32>
    %193 = vector.shape_cast %192 : vector<2xf32> to vector<2x1xf32>
    %194 = arith.addf %188, %193 : vector<2x1xf32>
    %195 = vector.extract_strided_slice %183 {offsets = [0, 64], sizes = [1, 6], strides = [1, 1]} : vector<1x128xf32> to vector<1x6xf32>
    %196 = vector.broadcast %195 : vector<1x6xf32> to vector<2x6xf32>
    %197 = arith.mulf %182, %196 : vector<2x6xf32>
    %cst_76 = arith.constant dense<0.000000e+00> : vector<2xf32>
    %198 = vector.multi_reduction <add>, %197, %cst_76 [1] : vector<2x6xf32> to vector<2xf32>
    %199 = vector.shape_cast %198 : vector<2xf32> to vector<2x1xf32>
    %200 = arith.addf %194, %199 : vector<2x1xf32>
    %c75 = arith.constant 75 : index
    %c0_77 = arith.constant 0 : index
    %201 = vector.load %arg5[%c75, %c0_77] : memref<80x128xf32, #tpu.memory_space<vmem>>, vector<1x1xf32>
    %202 = vector.broadcast %201 : vector<1x1xf32> to vector<2x1xf32>
    %203 = arith.addf %200, %202 : vector<2x1xf32>
    %c0_78 = arith.constant 0 : index
    %c0_79 = arith.constant 0 : index
    %204 = vector.load %arg6[%c0_78, %c0_79] : memref<2x1xf32, #tpu.memory_space<vmem>>, vector<2x1xf32>
    tpu.vector_store %arg6[%c0_78, %c0_79], %203 {strides = array<i32>} : memref<2x1xf32, #tpu.memory_space<vmem>>, vector<2x1xf32>,
    return
  }
}

</mosaic_0001>

<bundles_post_ra>
// kernel: fpgnn_forward.1
= control target key start
LH: loop header
LB: loop body
LE: loop exit
PB: predicated region body
PF: predicated region fallthrough
CT: control target
= control target key end

     0   :  { %11 = vsyncpa [#allocation4], 0  ;;  %s2572_s0 = inlined_call_operand.hbm [shape: f32[2,2304], index: 0, kind: input, shape index: {}]   ;;  %s2573_s1 = inlined_call_operand.vmem [shape: f32[12,6], index: 1, kind: input, shape index: {}]   ;;  %s2574_s2 = inlined_call_operand.vmem [shape: f32[12,12], index: 2, kind: input, shape index: {}]   ;;  %s2575_s3 = inlined_call_operand.vmem [shape: f32[2,12], index: 3, kind: input, shape index: {}]   ;;  %s2576_s4 = inlined_call_operand.hbm [shape: bf16[32,2304], index: 4, kind: input, shape index: {}]   ;;  %s2577_s5 = inlined_call_operand.hbm [shape: f32[80,128], index: 5, kind: input, shape index: {}]   ;;  %s2578_s6 = inlined_call_operand.vmem [shape: f32[2,1], index: 6, kind: output, shape index: {}]  }
   0x1   :  { %12 = vsyncpa [#allocation6], 0  ;;  %s2272_s21 = smov [#allocation5]   ;;  %s2202_s25 = scalar_lea.hbm %s2576_s4, 4608 }
   0x2   :  { %s34_s22 = sshll.u32 %s2272_s21, 4  ;;  %p2203_p0 = scmp.ne.s32.totalorder %s2576_s4, %s2202_s25  ;;  %s35_s22 = int_to_ptr.vmem [resolvable:$true] %s34_s22 }
   0x3   :  { %p2206_p1 = scmp.lt.u32.totalorder %s2202_s25, %s2576_s4 }
   0x5   :  { %p2208_p2 = pnand %p2206_p1, %p2203_p0 }
   0x7   :  { %2211 = shalt.err (!%p2208_p2)
}
   0x8   :  { %s2212_s30 = scalar_lea.vmem %s35_s22, 4608  ;;  %p2217_p4 = scmp.lt.s32.totalorder %s35_s22, %s35_s22 }
   0x9   :  { %p2213_p3 = scmp.ne.s32.totalorder %s35_s22, %s2212_s30  ;;  %p2218_p5 = scmp.lt.s32.totalorder %s2212_s30, %s2212_s30 }
   0xb   :  { %p2219_p6 = por %p2218_p5, %p2217_p4 }
   0xd   :  { %p2220_p7 = pnand %p2219_p6, %p2213_p3 }
   0xf   :  { %2223 = shalt.err (!%p2220_p7)
}
  0x10   :  { %s2273_s7 = smov 1152   ;;  %s2274_s8 = smov 72  }
  0x11   :  { %40 = dma.hbm_to_vmem [thread:$0]  %s2576_s4, 4608, %s35_s22, [#allocation6], %s2273_s7, %s2273_s7, %s2274_s8  }
  0x12   :  { %s2275_s11 = smov [#allocation3]   ;;  %s2276_s13 = smov [#allocation7]  }
  0x13   :  { %s19_s12 = sshll.u32 %s2275_s11, 4  ;;  %s46_s14 = sshll.u32 %s2276_s13, 4  ;;  %s20_s12 = int_to_ptr.vmem [resolvable:$true] %s19_s12  ;;  %s47_s14 = int_to_ptr.vmem [resolvable:$true] %s46_s14 }
  0x14   :  { %s2224_s17 = scalar_lea.hbm %s2572_s0, 576 }
  0x15   :  { %p2225_p8 = scmp.ne.s32.totalorder %s2572_s0, %s2224_s17  ;;  %p2228_p9 = scmp.lt.u32.totalorder %s2224_s17, %s2572_s0 }
  0x17   :  { %p2230_p10 = pnand %p2228_p9, %p2225_p8 }
  0x19   :  { %2233 = shalt.err (!%p2230_p10)
}
  0x1a   :  { %s2234_s4 = scalar_lea.vmem %s20_s12, 576  ;;  %p2239_p12 = scmp.lt.s32.totalorder %s20_s12, %s20_s12 }
  0x1b   :  { %p2235_p11 = scmp.ne.s32.totalorder %s20_s12, %s2234_s4  ;;  %p2240_p13 = scmp.lt.s32.totalorder %s2234_s4, %s2234_s4 }
  0x1d   :  { %p2241_p0 = por %p2240_p13, %p2239_p12 }
  0x1f   :  { %p2242_p1 = pnand %p2241_p0, %p2235_p11 }
  0x21   :  { %2245 = shalt.err (!%p2242_p1)
}
  0x22   :  { %22 = dma.hbm_to_vmem [thread:$0]  %s2572_s0, 576, %s20_s12, [#allocation4]  }
  0x23   :  { %s2246_s26 = scalar_lea.hbm %s2577_s5, 1280 }
  0x24   :  { %p2247_p2 = scmp.ne.s32.totalorder %s2577_s5, %s2246_s26  ;;  %p2250_p3 = scmp.lt.u32.totalorder %s2246_s26, %s2577_s5 }
  0x26   :  { %p2252_p4 = pnand %p2250_p3, %p2247_p2 }
  0x28   :  { %2255 = shalt.err (!%p2252_p4)
}
  0x29   :  { %s2256_s7 = scalar_lea.vmem %s47_s14, 1280  ;;  %p2261_p6 = scmp.lt.s32.totalorder %s47_s14, %s47_s14 }
  0x2a   :  { %p2257_p5 = scmp.ne.s32.totalorder %s47_s14, %s2256_s7  ;;  %p2262_p7 = scmp.lt.s32.totalorder %s2256_s7, %s2256_s7 }
  0x2c   :  { %p2263_p8 = por %p2262_p7, %p2261_p6 }
  0x2e   :  { %p2264_p9 = pnand %p2263_p8, %p2257_p5 }
  0x30   :  { %2267 = shalt.err (!%p2264_p9)
}
  0x31   :  { %s2277_s0 = smov 128   ;;  %s2278_s8 = smov 8  }
  0x32   :  { %52 = dma.hbm_to_vmem [thread:$0]  %s2577_s5, 1280, %s47_s14, [#allocation6], %s2277_s0, %s2277_s0, %s2278_s8  }
  0x33   :  { %2268 = dma.done.wait [#allocation4], 576  }
  0x34   :  { %2269 = vsyncadd [#allocation4], 4294966720 }
  0x35   :  { %2270 = dma.done.wait [#allocation6], 5888  }
  0x36   :  { %2271 = vsyncadd [#allocation6], 4294961408  ;;  %v77_v0 = vlaneseq  ;;  %v2279_v1 = vmov 1983009808   ;;  %v2112_v5 = vld [vmem:[#allocation5 + $0xc] ss:$72 sps:$4 sm:$0xff]  }
  0x37   :  { %v75_v2 = vunpack.c.l.s4 %v2279_v1  ;;  %v2114_v6 = vld [vmem:[#allocation5 + $0x8] ss:$72 sps:$4 sm:$0xff]   ;;  %426 = vmatprep.subr.bf16.mxu0 %v2112_v5  ;;  %v2115_v8 = vld [vmem:[#allocation5 + $0x9c] ss:$72 sps:$4 sm:$0xff]   ;;  %v2117_v15 = vld [vmem:[#allocation5 + $0x98] ss:$72 sps:$4 sm:$0xff]  }
  0x38   :  { %v2360_v4 = vshrl.u32 %v77_v0, 7  ;;  %v63_v9 = vld [vmem:[#allocation3] sm:$0xff]  ;;  %427 = vmatpush1.bf16.xpose.msra.mxu0 %v2114_v6  ;;  %v64_v13 = vld [vmem:[#allocation3 + $0x8] sm:$0xff]  ;;  %v2119_v25 = vld [vmem:[#allocation5 + $0x10] ss:$72 sps:$4 sm:$0xff]   ;;  %s2280_s5 = smov 96  }
  0x39   :  { %v76_v3 = vunpack.c.0.s8 %v75_v2  ;;  %v73_v10 = vcombine.high %v63_v9, %v63_v9  ;;  %428 = vmatprep.subr.bf16.mxu0 %v2115_v8  ;;  %v2121_v19 = vld [vmem:[#allocation5 + $0x14] ss:$72 sps:$4 sm:$0xff]   ;;  %v2141_v22 = vld [vmem:[#allocation5 + $0x4] ss:$72 sps:$4 sm:$0xff]   ;;  %v2143_v24 = vld [vmem:[#allocation5] ss:$72 sps:$4 sm:$0xff]   ;;  %v90_v29 = vcombine.high %v64_v13, %v64_v13 }
  0x3a   :  { %386 = vmatprep.subr.bf16.mxu1 %v2141_v22  ;;  %v2124_v27 = vld [vmem:[#allocation5 + $0xa4] ss:$72 sps:$4 sm:$0xff]   ;;  %v2147_v28 = vld [vmem:[#allocation5 + $0x94] ss:$72 sps:$4 sm:$0xff]   ;;  %v2149_v30 = vld [vmem:[#allocation5 + $0x90] ss:$72 sps:$4 sm:$0xff]  }
  0x3b   :  { %v2363_v7 = vsub.s32 %v76_v3, %v2360_v4  ;;  %387 = vmatpush1.bf16.xpose.msra.mxu1 %v2143_v24  ;;  %v2156_v31 = vld [vmem:[#allocation5 + $0x44] ss:$72 sps:$4 sm:$0xff]   ;;  %v2122_v32 = vld [vmem:[#allocation5 + $0xa0] ss:$72 sps:$4 sm:$0xff]   ;;  %v775_v39 = vld [vmem:[#allocation7 + $0x10] sm:$0xff]  ;;  %vm2282_vm0 = vmmov 0  }
  0x3c   :  { %388 = vmatprep.subr.bf16.mxu1 %v2147_v28  ;;  %v2127_v33 = vld [vmem:[#allocation5 + $0x1c] ss:$72 sps:$4 sm:$0xff]   ;;  %v774_v38 = vld [vmem:[#allocation7 + $0x8] sm:$0xff]  ;;  %v2125_v49 = vld [vmem:[#allocation5 + $0x18] ss:$72 sps:$4 sm:$0xff]   ;;  %vm785_vm1 = vcmask 261120  }
  0x3d   :  { %v80_v11 = vrot.slane %v63_v9, %v2363_v7  ;;  %v87_v12 = vrot.slane %v73_v10, %v2363_v7  ;;  %v97_v17 = vrot.slane %v64_v13, %v2363_v7  ;;  %v104_v34 = vrot.slane %v90_v29, %v2363_v7  ;;  %v1855_v35 = vld.sshfl [vmem:[#allocation3 + $0x20] sm:$0x33 pattern:$0x76325410]  ;;  %v773_v37 = vld [vmem:[#allocation7] sm:$0xff]  ;;  %v65_v52 = vld [vmem:[#allocation3 + $0x10] sm:$0xff] }
  0x3e   :  { %v148_v36 = vcombine.high %v1855_v35, %v1855_v35  ;;  %v776_v40 = vld [vmem:[#allocation7 + $0x18] sm:$0xff]  ;;  %v2369_v43 = vpack.c.bf16 %v774_v38, %v773_v37  ;;  %v2154_v44 = vld [vmem:[#allocation5 + $0x40] ss:$72 sps:$4 sm:$0xff]   ;;  %v2130_v51 = vld [vmem:[#allocation5 + $0xac] ss:$72 sps:$4 sm:$0xff]   ;;  %v114_v55 = vrot.slane %v65_v52, %v2363_v7  ;;  %v183_v58 = vpack.c.bf16 %v1855_v35, %v1855_v35  ;;  %s2285_s18 = smov 112  }
  0x3f   :  { %v88_v14 = vcombine.high %v80_v11, %v80_v11  ;;  %v89_v16 = vcombine.high %v87_v12, %v87_v12  ;;  %v105_v21 = vcombine.high %v97_v17, %v97_v17  ;;  %v169_v23 = vpack.c.bf16 %v87_v12, %v87_v12  ;;  %v2162_v46 = vld [vmem:[#allocation5 + $0xd4] ss:$72 sps:$4 sm:$0xff]   ;;  %v2160_v53 = vld [vmem:[#allocation5 + $0xd0] ss:$72 sps:$4 sm:$0xff]   ;;  %v2134_v56 = vld [vmem:[#allocation5 + $0x24] ss:$72 sps:$4 sm:$0xff]  }
  0x40   :  { %429 = vmatpush1.bf16.xpose.msra.mxu0 %v2117_v15  ;;  %v106_v41 = vcombine.high %v104_v34, %v104_v34  ;;  %v167_v42 = vpack.c.bf16 %v80_v11, %v80_v11  ;;  %v184_v45 = vpack.c.bf16 %v148_v36, %v148_v36  ;;  %837 = vrot.lane.b32.xlu0 %v2369_v43, %s2280_s5  ;;  %v2128_v54 = vld [vmem:[#allocation5 + $0xa8] ss:$72 sps:$4 sm:$0xff]   ;;  %v2137_v62 = vld [vmem:[#allocation5 + $0xb4] ss:$72 sps:$4 sm:$0xff]   ;;  %v2144_v11 = vld [vmem:[#allocation5 + $0xb8] ss:$72 sps:$4 sm:$0xff]  }
  0x41   :  { %v168_v18 = vpack.c.bf16 %v88_v14, %v88_v14  ;;  %v170_v20 = vpack.c.bf16 %v89_v16, %v89_v16  ;;  %466 = vmatprep.subr.bf16.mxu0 %v2121_v19  ;;  %v172_v26 = vpack.c.bf16 %v105_v21, %v105_v21  ;;  %v2373_v47 = vpack.c.bf16 %v776_v40, %v775_v39  ;;  %v2132_v60 = vld [vmem:[#allocation5 + $0x20] ss:$72 sps:$4 sm:$0xff]   ;;  %v2135_v0 = vld [vmem:[#allocation5 + $0xb0] ss:$72 sps:$4 sm:$0xff]   ;;  %v2140_v2 = vld [vmem:[#allocation5 + $0x2c] ss:$72 sps:$4 sm:$0xff]  }
  0x42   :  { %v171_v48 = vpack.c.bf16 %v97_v17, %v97_v17  ;;  %v174_v50 = vpack.c.bf16 %v106_v41, %v106_v41  ;;  %v122_v57 = vcombine.high %v114_v55, %v114_v55  ;;  %v173_v59 = vpack.c.bf16 %v104_v34, %v104_v34  ;;  %v2138_v6 = vld [vmem:[#allocation5 + $0x28] ss:$72 sps:$4 sm:$0xff]   ;;  %v2146_v9 = vld [vmem:[#allocation5 + $0xbc] ss:$72 sps:$4 sm:$0xff]   ;;  %v66_v10 = vld [vmem:[#allocation3 + $0x18] sm:$0xff]  ;;  %s2286_s19 = smov 16  }
  0x43   :  { %418 = vmatprep.mubr.bf16.mxu1 %v168_v18  ;;  %458 = vmatprep.mubr.bf16.mxu0 %v170_v20  ;;  %v107_v63 = vcombine.high %v65_v52, %v65_v52  ;;  %v175_v5 = vpack.c.bf16 %v114_v55, %v114_v55  ;;  %v131_v12 = vrot.slane %v66_v10, %v2363_v7  ;;  %v2153_v13 = vld [vmem:[#allocation5 + $0x34] ss:$72 sps:$4 sm:$0xff]   ;;  %v2151_v16 = vld [vmem:[#allocation5 + $0x30] ss:$72 sps:$4 sm:$0xff]   ;;  %v2159_v18 = vld [vmem:[#allocation5 + $0xc4] ss:$72 sps:$4 sm:$0xff]  }
  0x44   :  { %389 = vmatpush1.bf16.xpose.msra.mxu1 %v2149_v30  ;;  %839 = vrot.lane.b32.xlu0 %v2373_v47, %s2280_s5  ;;  %v176_v61 = vpack.c.bf16 %v122_v57, %v122_v57  ;;  %v124_v19 = vcombine.high %v66_v10, %v66_v10  ;;  %v2157_v20 = vld [vmem:[#allocation5 + $0xc0] ss:$72 sps:$4 sm:$0xff]   ;;  %v2165_v22 = vld [vmem:[#allocation5 + $0x3c] ss:$72 sps:$4 sm:$0xff]   ;;  %v2281_v30 = vmov 0.0   ;;  %vm899_vm2 = vcmask 1042432  }
  0x45   :  { %732 = vmatprep.subr.bf16.mxu1 %v2156_v31  ;;  %v121_v1 = vrot.slane %v107_v63, %v2363_v7  ;;  %v139_v14 = vcombine.high %v131_v12, %v131_v12  ;;  %v179_v24 = vpack.c.bf16 %v131_v12, %v131_v12  ;;  %v2166_v28 = vld [vmem:[#allocation5 + $0xc8] ss:$72 sps:$4 sm:$0xff]   ;;  %v1889_v34 = vld [vmem:[#allocation7 + $0x40] ss:$0 sm:$0xff]  ;;  %v887_v57 = vld [vmem:[%s2573_s1 + $0x8] sm:$0xf] }
  0x46   :  { %v138_v21 = vrot.slane %v124_v19, %v2363_v7  ;;  %vm895_vm3 = vcmask 48128   ;;  %vm952_vm4 = vcmask 64512   ;;  %vm1082_vm6 = vcmask 1045504   ;;  %v2437_v19 = vld [vmem:[#allocation7 + $0x44] sm:$0x1]  ;;  %s2287_s20 = smov 64  }
  0x47   :  { %459 = vmatmul.mubr.bf16.vlgmr.msra.gmra.mrb[0].mxu0 %v169_v23  ;;  %v123_v3 = vcombine.high %v121_v1, %v121_v1  ;;  %v177_v15 = vpack.c.bf16 %v121_v1, %v121_v1  ;;  %v180_v17 = vpack.c.bf16 %v139_v14, %v139_v14  ;;  %vm2417_vm5 = vmpackc.low %vm952_vm4, %vm952_vm4  ;;  %vm956_vm7 = vcmask 60416  }
  0x48   :  { %467 = vmatpush1.bf16.xpose.msra.mxu0 %v2119_v25  ;;  %498 = vmatprep.mubr.bf16.mxu0 %v172_v26  ;;  %v140_v23 = vcombine.high %v138_v21, %v138_v21  ;;  %v2163_v25 = vld [vmem:[#allocation5 + $0x38] ss:$72 sps:$4 sm:$0xff]   ;;  %v181_v29 = vpack.c.bf16 %v138_v21, %v138_v21  ;;  %v2442_v21 = vsub.s32 0, %v2360_v4  ;;  %vm1053_vm12 = vcmask 97280  }
  0x49   :  { %468 = vmatprep.subr.bf16.mxu0 %v2124_v27  ;;  %v178_v8 = vpack.c.bf16 %v123_v3, %v123_v3  ;;  %v2168_v27 = vld [vmem:[#allocation5 + $0xcc] ss:$72 sps:$4 sm:$0xff]   ;;  %vm1057_vm13 = vcmask 93184  }
  0x4a   :  { %v182_v26 = vpack.c.bf16 %v140_v23, %v140_v23 }
  0x4b   :  { %419 = vmatmul.mubr.bf16.vlgmr.msra.gmra.mrb[0].mxu1 %v167_v42 }
  0x4c   :  { %733 = vmatpush1.bf16.xpose.msra.mxu1 %v2154_v44  ;;  %764 = vmatprep.mubr.bf16.mxu1 %v184_v45  ;;  %v1856_v44 = vld [vmem:[#allocation7 + $0x42] ss:$0 sm:$0xff]  ;;  %v892_v45 = vld [vmem:[#allocation7 + $0x38] sm:$0x3f] }
  0x4d   :  { %734 = vmatprep.subr.bf16.mxu1 %v2162_v46 }
  0x50   :  { %469 = vmatpush1.bf16.xpose.msra.mxu0 %v2122_v32 }
  0x51   :  { %506 = vmatprep.subr.bf16.mxu0 %v2127_v33 }
  0x54   :  { %735 = vmatpush1.bf16.xpose.msra.mxu1 %v2160_v53 }
  0x55   :  { %1956 = vmatprep.subr.bf16.mxu1 %v2281_v30 }
  0x57   :  { %499 = vmatmul.mubr.bf16.vlgmr.msra.gmra.mrb[0].mxu0 %v171_v48 }
  0x58   :  { %507 = vmatpush1.bf16.xpose.msra.mxu0 %v2125_v49  ;;  %538 = vmatprep.mubr.bf16.mxu0 %v174_v50  ;;  %v893_v50 = vpack.c.bf16 %v892_v45, %v892_v45 }
  0x59   :  { %508 = vmatprep.subr.bf16.mxu0 %v2130_v51 }
  0x5a   :  { %v901_v55 = vsel %vm899_vm2, %v893_v50, 0 }
  0x5b   :  { %765 = vmatmul.mubr.bf16.vlgmr.msra.gmra.mrb[4].mxu1 %v183_v58 }
  0x5c   :  { %1957 = vmatpush3.bf16.msra.mxu1 %v2369_v43  ;;  %1960 = vmatprep.mubr.msk.bf16.mxu1 %vm2282_vm0, %v2281_v30 }
  0x5d   :  { %1958 = vmatprep.subr.bf16.mxu1 %v2281_v30 }
  0x60   :  { %509 = vmatpush1.bf16.xpose.msra.mxu0 %v2128_v54  ;;  %1959 = vmatpush3.bf16.msra.mxu1 %v2373_v47 }
  0x61   :  { %546 = vmatprep.subr.bf16.mxu0 %v2134_v56  ;;  %1964 = vmatprep.subr.bf16.mxu1 %v2281_v30  ;;  %v886_v56 = vld [vmem:[%s2573_s1] sm:$0xff] }
  0x62   :  { %v894_v58 = vpack.c.bf16 %v887_v57, %v886_v56 }
  0x67   :  { %539 = vmatmul.mubr.bf16.vlgmr.msra.gmra.mrb[0].mxu0 %v173_v59  ;;  %v2283_v59 = vmov 0.0|0.0  }
  0x68   :  { %547 = vmatpush1.bf16.xpose.msra.mxu0 %v2132_v60  ;;  %578 = vmatprep.mubr.bf16.mxu0 %v176_v61 }
  0x69   :  { %548 = vmatprep.subr.bf16.mxu0 %v2137_v62 }
  0x70   :  { %549 = vmatpush1.bf16.xpose.msra.mxu0 %v2135_v0 }
  0x71   :  { %586 = vmatprep.subr.bf16.mxu0 %v2140_v2 }
  0x77   :  { %579 = vmatmul.mubr.bf16.vlgmr.msra.gmra.mrb[0].mxu0 %v175_v5  ;;  %v1899_v5 = vld [vmem:[#allocation7 + $0x45] ss:$0 sm:$0xff] }
  0x78   :  { %587 = vmatpush1.bf16.xpose.msra.mxu0 %v2138_v6  ;;  %618 = vmatprep.mubr.bf16.mxu0 %v178_v8 }
  0x79   :  { %588 = vmatprep.subr.bf16.mxu0 %v2146_v9 }
  0x80   :  { %589 = vmatpush1.bf16.xpose.msra.mxu0 %v2144_v11 }
  0x81   :  { %626 = vmatprep.subr.bf16.mxu0 %v2153_v13 }
  0x87   :  { %619 = vmatmul.mubr.bf16.vlgmr.msra.gmra.mrb[0].mxu0 %v177_v15 }
  0x88   :  { %627 = vmatpush1.bf16.xpose.msra.mxu0 %v2151_v16  ;;  %658 = vmatprep.mubr.bf16.mxu0 %v180_v17 }
  0x89   :  { %628 = vmatprep.subr.bf16.mxu0 %v2159_v18 }
  0x90   :  { %629 = vmatpush1.bf16.xpose.msra.mxu0 %v2157_v20 }
  0x91   :  { %666 = vmatprep.subr.bf16.mxu0 %v2165_v22 }
  0x97   :  { %659 = vmatmul.mubr.bf16.vlgmr.msra.gmra.mrb[0].mxu0 %v179_v24 }
  0x98   :  { %667 = vmatpush1.bf16.xpose.msra.mxu0 %v2163_v25  ;;  %698 = vmatprep.mubr.bf16.mxu0 %v182_v26  ;;  %v2448_v25 = vld [vmem:[%s2574_s2] sm:$0xff]  ;;  %v2453_v26 = vld [vmem:[%s2574_s2 + $0x8] sm:$0xf]  ;;  %s2284_s2 = smov 120  }
  0x99   :  { %668 = vmatprep.subr.bf16.mxu0 %v2168_v27  ;;  %vm890_vm8 = vcmp.gt.f32.partialorder %v2448_v25, 0.0  ;;  %vm891_vm9 = vcmp.gt.f32.partialorder %v2453_v26, 0.0  ;;  %v1921_v26 = vld [vmem:[#allocation7 + $0x4a] ss:$0 sm:$0xff] }
  0xa0   :  { %669 = vmatpush1.bf16.xpose.msra.mxu0 %v2166_v28 }
  0xa1   :  { %2044 = vmatprep.subr.bf16.mxu0 %v2283_v59 }
  0xa7   :  { %699 = vmatmul.mubr.bf16.vlgmr.msra.gmra.mrb[0].mxu0 %v181_v29 }
  0xa8   :  { %1982 = vmatprep.mubr.msk.f32.mxu0 %vm2282_vm0, %v2281_v30 }
  0xb2   :  { %v838_v41 = vpop.permute.xlu0 %837 }
  0xb6   :  { %v840_v43 = vpop.permute.xlu0 %839 }
 0x11e   :  { %v420_v7 = vpop.f32.mrb[0].mxu1 }
 0x11f   :  { %v422_v31 = vpop.f32.mrb[1].mxu1  ;;  %v421_v46 = vadd.f32 %v1856_v44, %v420_v7 }
 0x120   :  { %v423_v32 = vpop.f32.mrb[2].mxu1 }
 0x121   :  { %v424_v33 = vpop.f32.mrb[3].mxu1 }
 0x12e   :  { %v766_v35 = vpop.f32.mrb[4].mxu1 }
 0x12f   :  { %v767_v36 = vadd.f32 %v1889_v34, %v766_v35  ;;  %v768_v37 = vpop.f32.mrb[5].mxu1 }
 0x130   :  { %v769_v38 = vpop.f32.mrb[6].mxu1 }
 0x131   :  { %v772_v39 = vmax.f32 %v767_v36, 0.0  ;;  %v770_v40 = vpop.f32.mrb[7].mxu1 }
 0x133   :  { %v779_v42 = vpack.c.bf16 %v772_v39, %v772_v39 }
 0x135   :  { %1961 = vmatmul.mubr.msk.bf16.vlgmr.msra.gmra.mrb[8].mxu1 %vm785_vm1, %v779_v42 }
 0x136   :  { %1965 = vmatpush3.bf16.msra.mxu1 %v838_v41  ;;  %1968 = vmatprep.mubr.msk.bf16.mxu1 %vm2282_vm0, %v2281_v30 }
 0x137   :  { %1966 = vmatprep.subr.bf16.mxu1 %v2281_v30 }
 0x13a   :  { %1967 = vmatpush3.bf16.msra.mxu1 %v840_v43 }
 0x13b   :  { %1972 = vmatprep.subr.bf16.mxu1 %v2281_v30 }
 0x17a   :  { %v700_v47 = vpop.f32.mrb[0].mxu0 }
 0x17b   :  { %v2061_v48 = vadd.f32 %v700_v47, %v421_v46  ;;  %v702_v49 = vpop.f32.mrb[1].mxu0 }
 0x17c   :  { %v703_v51 = vpop.f32.mrb[2].mxu0 }
 0x17d   :  { %v706_v52 = vmax.f32 %v2061_v48, 0.0  ;;  %v704_v53 = vpop.f32.mrb[3].mxu0 }
 0x17f   :  { %v829_v54 = vpack.c.bf16 %v706_v52, %v706_v52 }
 0x181   :  { %1969 = vmatmul.mubr.msk.bf16.vlgmr.msra.gmra.mrb[12].mxu1 %vm785_vm1, %v829_v54 }
 0x182   :  { %1973 = vmatpush3.bf16.msra.mxu1 %v901_v55  ;;  %1974 = vmatprep.mubr.msk.bf16.mxu1 %vm2282_vm0, %v2281_v30 }
 0x183   :  { %1985 = vmatprep.subr.bf16.mxu1 %v2281_v30 }
 0x189   :  { %1975 = vmatmul.mubr.msk.bf16.vlgmr.msra.gmra.mrb[16].mxu1 %vm895_vm3, %v894_v58 }
 0x18a   :  { %1987 = vmatprep.mubr.msk.bf16.mxu1 %vm2282_vm0, %v2281_v30 }
 0x208   :  { %v2409_v60 = vpop.f32.mrb[8].mxu1 }
 0x209   :  { %v1962_v61 = vpop.f32.mrb[9].mxu1 }
 0x20a   :  { %v826_v62 = vpop.f32.mrb[10].mxu1 }
 0x20b   :  { %v1963_v63 = vpop.f32.mrb[11].mxu1 }
 0x254   :  { %v2411_v0 = vpop.f32.mrb[12].mxu1 }
 0x255   :  { %v1970_v1 = vpop.f32.mrb[13].mxu1 }
 0x256   :  { %v883_v2 = vpop.f32.mrb[14].mxu1 }
 0x257   :  { %v1971_v3 = vpop.f32.mrb[15].mxu1 }
 0x25c   :  { %v937_v6 = vpop.f32.mrb[16].mxu1 }
 0x25d   :  { %v1976_v8 = vpop.f32.mrb[17].mxu1  ;;  %v2413_v9 = vmul.f32 %v1899_v5, %v937_v6 }
 0x25e   :  { %v940_v10 = vpop.f32.mrb[18].mxu1 }
 0x25f   :  { %v2421_v12 = vpack.c.bf16 %v940_v10, %v937_v6  ;;  %v1977_v13 = vpop.f32.mrb[19].mxu1  ;;  %v953_v14 = vsel %vm952_vm4, %v2413_v9, 0.0  ;;  %v2425_v15 = vmul.f32 %v1899_v5, %v940_v10  ;;  %v2427_v16 = vpack.i.bf16 %v940_v10, %v937_v6 }
 0x260   :  { %954 = vadd.xlane.f32.xlu1 %v953_v14 }
 0x261   :  { %2047 = vmatpush3.bf16.xpose.msk.msra.mxu0 %vm2417_vm5, %v2421_v12  ;;  %v1084_v17 = vsel %vm1082_vm6, %v2421_v12, 0  ;;  %v957_v18 = vsel %vm956_vm7, %v2425_v15, 0.0 }
 0x262   :  { %1986 = vmatpush3.bf16.msra.mxu1 %v1084_v17 }
 0x263   :  { %2048 = vmatprep.subr.bf16.mxu1 %v2283_v59 }
 0x264   :  { %958 = vadd.xlane.f32.xlu1 %v957_v18 }
 0x268   :  { %1983 = vmatmul.mubr.msk.f32.vlgmr.msra.gmra.mrb[4].mxu0 %vm952_vm4, %v2437_v19 }
 0x2ed   :  { %v955_v20 = vpop.xlane.xlu1 %954 }
 0x2f1   :  { %v959_v27 = vpop.xlane.xlu1 %958 }
 0x33b   :  { %v1035_v22 = vpop.f32.mrb[4].mxu0 }
 0x33c   :  { %v1042_v23 = vrot.slane %v1035_v22, %v2442_v21  ;;  %v1984_v24 = vpop.f32.mrb[5].mxu0 }
 0x33e   :  { %v1043_v28 = vadd.f32 %v1042_v23, %v955_v20  ;;  %v1044_v29 = vadd.f32 %v1042_v23, %v959_v27 }
 0x340   :  { %vm1045_vm10 = vcmp.ge.f32.partialorder %v1043_v28, 0.0  ;;  %v1047_v4 = vmul.f32 0.2, %v1043_v28  ;;  %vm1046_vm11 = vcmp.ge.f32.partialorder %v1044_v29, 0.0  ;;  %v1048_v7 = vmul.f32 0.2, %v1044_v29 }
 0x342   :  { %v1049_v31 = vsel %vm1045_vm10, %v1043_v28, %v1047_v4  ;;  %v1050_v32 = vsel %vm1046_vm11, %v1044_v29, %v1048_v7  ;;  %vm1512_vm10 = vcmask 195712   ;;  %vm1514_vm11 = vcmask 191616  }
 0x343   :  { %v1051_v33 = vsel %vm890_vm8, %v1049_v31, -1e+30  ;;  %v1052_v34 = vsel %vm891_vm9, %v1050_v32, -1e+30 }
 0x344   :  { %v1054_v35 = vsel %vm1053_vm12, %v1051_v33, -inf  ;;  %v1058_v36 = vsel %vm1057_vm13, %v1052_v34, -inf }
 0x345   :  { %1055 = vmax.xlane.f32.xlu0 %v1054_v35  ;;  %1059 = vmax.xlane.f32.xlu1 %v1058_v36 }
 0x35b   :  { %1131 = vrot.lane.b32.xlu0 %v2413_v9, %s2284_s2 }
 0x3d2   :  { %v1056_v37 = vpop.xlane.xlu0 %1055  ;;  %v1060_v38 = vpop.xlane.xlu1 %1059 }
 0x3d3   :  { %v1061_v39 = vsub.f32 %v1051_v33, %v1056_v37  ;;  %v1062_v40 = vsub.f32 %v1052_v34, %v1060_v38 }
 0x3d5   :  { %v1063_v41 = vmul.f32 1.442695, %v1061_v39  ;;  %v1065_v42 = vmul.f32 1.442695, %v1062_v40 }
 0x3d6   :  { %v1132_v47 = vpop.permute.xlu0 %1131 }
 0x3d7   :  { %2170 = vpow2.f32 %v1063_v41  ;;  %v1137_v48 = vsel %vm952_vm4, %v1132_v47, 0.0 }
 0x3d8   :  { %2172 = vpow2.f32 %v1065_v42 }
 0x3e1   :  { %v2171_v43 = vpop.eup %2170 }
 0x3e2   :  { %v1067_v44 = vsel %vm1053_vm12, %v2171_v43, 0.0  ;;  %v2173_v45 = vpop.eup %2172 }
 0x3e3   :  { %1068 = vadd.xlane.f32.xlu1 %v1067_v44  ;;  %v1070_v46 = vsel %vm1057_vm13, %v2173_v45, 0.0 }
 0x3e7   :  { %1071 = vadd.xlane.f32.xlu1 %v1070_v46 }
 0x3f8   :  { %2103 = vrot.lane.b32.xlu1 %v2427_v16, %s2284_s2 }
 0x3fc   :  { %1143 = vrot.lane.b32.xlu1 %v2437_v19, %s2284_s2 }
 0x400   :  { %1133 = vrot.lane.b32.xlu1 %v2425_v15, %s2284_s2 }
 0x424   :  { %1138 = vadd.xlane.f32.xlu1 %v1137_v48 }
 0x470   :  { %v1069_v49 = vpop.xlane.xlu1 %1068 }
 0x471   :  { %2174 = vrcp.f32 %v1069_v49 }
 0x474   :  { %v1072_v50 = vpop.xlane.xlu1 %1071 }
 0x475   :  { %2176 = vrcp.f32 %v1072_v50 }
 0x478   :  { %v2104_v51 = vpop.permute.xlu1 %2103 }
 0x479   :  { %v2106_v55 = vunpack.i.h.bf16 %v2104_v51  ;;  %v2105_v56 = vunpack.i.l.bf16 %v2104_v51 }
 0x47b   :  { %v2175_v53 = vpop.eup %2174  ;;  %v2049_v1 = vpack.c.bf16 %v2106_v55, %v2105_v56 }
 0x47c   :  { %v1144_v52 = vpop.permute.xlu1 %1143  ;;  %v1075_v57 = vmul.f32 %v2175_v53, %v2171_v43 }
 0x47f   :  { %v2177_v54 = vpop.eup %2176 }
 0x480   :  { %v1076_v58 = vmul.f32 %v2177_v54, %v2173_v45  ;;  %v1134_v61 = vpop.permute.xlu1 %1133 }
 0x481   :  { %v1140_v62 = vsel %vm956_vm7, %v1134_v61, 0.0 }
 0x482   :  { %1141 = vadd.xlane.f32.xlu0 %v1140_v62  ;;  %v1077_v63 = vpack.c.bf16 %v1076_v58, %v1075_v57 }
 0x484   :  { %1988 = vmatmul.mubr.msk.bf16.vlgmr.msra.gmra.mrb[20].mxu1 %vm1053_vm12, %v1077_v63 }
 0x485   :  { %2051 = vmatpush3.bf16.xpose.msk.msra.mxu1 %vm2417_vm5, %v2049_v1  ;;  %1995 = vmatprep.mubr.msk.f32.mxu1 %vm2282_vm0, %v2281_v30 }
 0x486   :  { %1998 = vmatprep.subr.bf16.mxu1 %v2281_v30 }
 0x48c   :  { %1996 = vmatmul.mubr.msk.f32.vlgmr.msra.gmra.mrb[24].mxu1 %vm952_vm4, %v1144_v52 }
 0x48d   :  { %2000 = vmatprep.mubr.msk.bf16.mxu1 %vm2282_vm0, %v2281_v30 }
 0x4b1   :  { %v1139_v14 = vpop.xlane.xlu1 %1138 }
 0x50f   :  { %v1142_v17 = vpop.xlane.xlu0 %1141 }
 0x557   :  { %v1120_v2 = vpop.f32.mrb[20].mxu1 }
 0x558   :  { %1127 = vst.msk [vmem:[#allocation2] sm:$0xff] %vm952_vm4, %v1120_v2  ;;  %v1989_v3 = vpop.f32.mrb[21].mxu1 }
 0x559   :  { %v1123_v5 = vpop.f32.mrb[22].mxu1 }
 0x55a   :  { %1128 = vst.msk [vmem:[#allocation2 + $0x8] sm:$0xf] %vm956_vm7, %v1123_v5  ;;  %v1990_v6 = vpop.f32.mrb[23].mxu1 }
 0x55f   :  { %v1221_v8 = vpop.f32.mrb[24].mxu1 }
 0x560   :  { %v1228_v10 = vrot.slane %v1221_v8, %v2442_v21  ;;  %v1997_v13 = vpop.f32.mrb[25].mxu1 }
 0x562   :  { %v1229_v18 = vadd.f32 %v1228_v10, %v1139_v14  ;;  %v1230_v20 = vadd.f32 %v1228_v10, %v1142_v17 }
 0x564   :  { %vm1231_vm14 = vcmp.ge.f32.partialorder %v1229_v18, 0.0  ;;  %v1233_v22 = vmul.f32 0.2, %v1229_v18  ;;  %vm1232_vm15 = vcmp.ge.f32.partialorder %v1230_v20, 0.0  ;;  %v1234_v23 = vmul.f32 0.2, %v1230_v20 }
 0x566   :  { %v1235_v24 = vsel %vm1231_vm14, %v1229_v18, %v1233_v22  ;;  %v1236_v27 = vsel %vm1232_vm15, %v1230_v20, %v1234_v23  ;;  %vm1531_vm14 = vcmask 195584   ;;  %vm2058_vm15 = vmpackc.low %vm895_vm3, %vm895_vm3 }
 0x567   :  { %v1237_v28 = vsel %vm890_vm8, %v1235_v24, -1e+30  ;;  %v1238_v4 = vsel %vm891_vm9, %v1236_v27, -1e+30 }
 0x568   :  { %v1239_v29 = vsel %vm1053_vm12, %v1237_v28, -inf  ;;  %v1242_v7 = vsel %vm1057_vm13, %v1238_v4, -inf }
 0x569   :  { %1240 = vmax.xlane.f32.xlu1 %v1239_v29 }
 0x56d   :  { %1243 = vmax.xlane.f32.xlu1 %v1242_v7 }
 0x5f6   :  { %v1241_v31 = vpop.xlane.xlu1 %1240 }
 0x5f7   :  { %v1245_v32 = vsub.f32 %v1237_v28, %v1241_v31 }
 0x5f9   :  { %v1247_v33 = vmul.f32 1.442695, %v1245_v32 }
 0x5fa   :  { %v1244_v34 = vpop.xlane.xlu1 %1243 }
 0x5fb   :  { %2178 = vpow2.f32 %v1247_v33  ;;  %v1246_v35 = vsub.f32 %v1238_v4, %v1244_v34 }
 0x5fd   :  { %v1249_v36 = vmul.f32 1.442695, %v1246_v35 }
 0x5ff   :  { %2180 = vpow2.f32 %v1249_v36 }
 0x605   :  { %v2179_v37 = vpop.eup %2178 }
 0x606   :  { %v1251_v38 = vsel %vm1053_vm12, %v2179_v37, 0.0 }
 0x607   :  { %1252 = vadd.xlane.f32.xlu1 %v1251_v38 }
 0x609   :  { %v2181_v39 = vpop.eup %2180 }
 0x60a   :  { %v1254_v40 = vsel %vm1057_vm13, %v2181_v39, 0.0 }
 0x60b   :  { %1255 = vadd.xlane.f32.xlu0 %v1254_v40 }
 0x618   :  { %1263 = vrot.lane.b32.xlu1 %v2421_v12, %s2284_s2 }
 0x61c   :  { %1336 = vrot.lane.b32.xlu1 %v2437_v19, %s2285_s18 }
 0x620   :  { %1324 = vrot.lane.b32.xlu1 %v2413_v9, %s2285_s18 }
 0x621   :  { %2108 = vrot.lane.b32.xlu0 %v2427_v16, %s2285_s18 }
 0x625   :  { %1326 = vrot.lane.b32.xlu0 %v2425_v15, %s2285_s18 }
 0x694   :  { %v1253_v41 = vpop.xlane.xlu1 %1252 }
 0x695   :  { %2182 = vrcp.f32 %v1253_v41 }
 0x698   :  { %v1256_v42 = vpop.xlane.xlu0 %1255  ;;  %v1264_v43 = vpop.permute.xlu1 %1263 }
 0x699   :  { %2184 = vrcp.f32 %v1256_v42  ;;  %v1269_v44 = vsel %vm1082_vm6, %v1264_v43, 0  ;;  %v1525_v42 = vld [vmem:[#allocation7 + $0x20] sm:$0xff]  ;;  %v1526_v43 = vld [vmem:[#allocation7 + $0x28] sm:$0xff] }
 0x69a   :  { %1999 = vmatpush3.bf16.msra.mxu1 %v1269_v44  ;;  %v1527_v44 = vld [vmem:[#allocation7 + $0x30] sm:$0xff] }
 0x69b   :  { %2052 = vmatprep.subr.bf16.mxu1 %v2283_v59 }
 0x69c   :  { %v2109_v19 = vpop.permute.xlu0 %2108  ;;  %v1337_v45 = vpop.permute.xlu1 %1336 }
 0x69d   :  { %v2111_v49 = vunpack.i.h.bf16 %v2109_v19  ;;  %v2110_v50 = vunpack.i.l.bf16 %v2109_v19  ;;  %v1528_v19 = vpack.c.bf16 %v1526_v43, %v1525_v42 }
 0x69f   :  { %v2183_v47 = vpop.eup %2182  ;;  %v2053_v54 = vpack.c.bf16 %v2111_v49, %v2110_v50 }
 0x6a0   :  { %v1327_v46 = vpop.permute.xlu0 %1326  ;;  %v1325_v9 = vpop.permute.xlu1 %1324  ;;  %v1259_v51 = vmul.f32 %v2183_v47, %v2179_v37 }
 0x6a1   :  { %v1333_v16 = vsel %vm956_vm7, %v1327_v46, 0.0  ;;  %v1330_v48 = vsel %vm952_vm4, %v1325_v9, 0.0  ;;  %vm1535_vm7 = vcmask 1043456  }
 0x6a2   :  { %1334 = vadd.xlane.f32.xlu0 %v1333_v16  ;;  %1331 = vadd.xlane.f32.xlu1 %v1330_v48 }
 0x6a3   :  { %v2185_v15 = vpop.eup %2184 }
 0x6a4   :  { %v1260_v52 = vmul.f32 %v2185_v15, %v2181_v39 }
 0x6a6   :  { %v1261_v53 = vpack.c.bf16 %v1260_v52, %v1259_v51  ;;  %v1912_v51 = vld [vmem:[#allocation7 + $0x46] ss:$0 sm:$0xff] }
 0x6a8   :  { %2001 = vmatmul.mubr.msk.bf16.vlgmr.msra.gmra.mrb[28].mxu1 %vm1053_vm12, %v1261_v53 }
 0x6a9   :  { %2055 = vmatpush3.bf16.xpose.msk.msra.mxu1 %vm2417_vm5, %v2053_v54  ;;  %2008 = vmatprep.mubr.msk.f32.mxu1 %vm2282_vm0, %v2281_v30  ;;  %vm1322_vm5 = vcmask 126016  }
 0x6aa   :  { %2011 = vmatprep.subr.bf16.mxu1 %v2281_v30 }
 0x6b0   :  { %2009 = vmatmul.mubr.msk.f32.vlgmr.msra.gmra.mrb[26].mxu1 %vm952_vm4, %v1337_v45  ;;  %vm1320_vm4 = vcmask 130112   ;;  %v1529_v45 = vpack.c.bf16 %v1527_v44, %v1527_v44 }
 0x6b1   :  { %2013 = vmatprep.mubr.msk.bf16.mxu1 %vm2282_vm0, %v2281_v30 }
 0x6b2   :  { %v1537_v46 = vsel %vm1535_vm7, %v1529_v45, 0 }
 0x72f   :  { %v1335_v11 = vpop.xlane.xlu0 %1334  ;;  %v1332_v1 = vpop.xlane.xlu1 %1331 }
 0x77b   :  { %v1305_v55 = vpop.f32.mrb[28].mxu1 }
 0x77c   :  { %v2002_v56 = vpop.f32.mrb[29].mxu1 }
 0x77d   :  { %v1308_v57 = vpop.f32.mrb[30].mxu1 }
 0x77e   :  { %v2003_v58 = vpop.f32.mrb[31].mxu1 }
 0x783   :  { %v1414_v61 = vpop.f32.mrb[26].mxu1 }
 0x784   :  { %v1421_v62 = vrot.slane %v1414_v61, %v2442_v21  ;;  %v2010_v63 = vpop.f32.mrb[27].mxu1 }
 0x786   :  { %v1422_v2 = vadd.f32 %v1421_v62, %v1332_v1  ;;  %v1423_v3 = vadd.f32 %v1421_v62, %v1335_v11 }
 0x788   :  { %vm1425_vm1 = vcmp.ge.f32.partialorder %v1423_v3, 0.0  ;;  %v1427_v5 = vmul.f32 0.2, %v1423_v3  ;;  %vm1424_vm2 = vcmp.ge.f32.partialorder %v1422_v2, 0.0  ;;  %v1426_v6 = vmul.f32 0.2, %v1422_v2 }
 0x78a   :  { %v1429_v8 = vsel %vm1425_vm1, %v1423_v3, %v1427_v5  ;;  %v1428_v10 = vsel %vm1424_vm2, %v1422_v2, %v1426_v6  ;;  %vm1591_vm1 = vcmask 44032   ;;  %v1580_v3 = vld [vmem:[#allocation7 + $0x47] sm:$0x1] }
 0x78b   :  { %v1431_v13 = vsel %vm891_vm9, %v1429_v8, -1e+30  ;;  %v1430_v14 = vsel %vm890_vm8, %v1428_v10, -1e+30 }
 0x78c   :  { %v1435_v17 = vsel %vm1057_vm13, %v1431_v13, -inf  ;;  %v1432_v18 = vsel %vm1053_vm12, %v1430_v14, -inf }
 0x78d   :  { %1436 = vmax.xlane.f32.xlu1 %v1435_v17  ;;  %1433 = vmax.xlane.f32.xlu0 %v1432_v18 }
 0x81a   :  { %v1437_v20 = vpop.xlane.xlu1 %1436  ;;  %v1434_v22 = vpop.xlane.xlu0 %1433 }
 0x81b   :  { %v1439_v23 = vsub.f32 %v1431_v13, %v1437_v20  ;;  %v1438_v24 = vsub.f32 %v1430_v14, %v1434_v22 }
 0x81d   :  { %v1442_v27 = vmul.f32 1.442695, %v1439_v23  ;;  %v1440_v28 = vmul.f32 1.442695, %v1438_v24 }
 0x81f   :  { %2186 = vpow2.f32 %v1442_v27 }
 0x820   :  { %2188 = vpow2.f32 %v1440_v28 }
 0x829   :  { %v2187_v29 = vpop.eup %2186 }
 0x82a   :  { %v2189_v4 = vpop.eup %2188  ;;  %v1447_v7 = vsel %vm1057_vm13, %v2187_v29, 0.0 }
 0x82b   :  { %1448 = vadd.xlane.f32.xlu1 %v1447_v7  ;;  %v1444_v31 = vsel %vm1053_vm12, %v2189_v4, 0.0 }
 0x82c   :  { %1445 = vadd.xlane.f32.xlu0 %v1444_v31 }
 0x83c   :  { %1314 = vrot.lane.b32.xlu1 %v1305_v55, %s2278_s8  ;;  %v1914_v55 = vld [vmem:[#allocation7 + $0x48] ss:$0 sm:$0xff] }
 0x840   :  { %1316 = vrot.lane.b32.xlu1 %v1308_v57, %s2278_s8 }
 0x842   :  { %1455 = vrot.lane.b32.xlu0 %v2421_v12, %s2285_s18 }
 0x8b8   :  { %v1449_v32 = vpop.xlane.xlu1 %1448 }
 0x8b9   :  { %2190 = vrcp.f32 %v1449_v32  ;;  %v1446_v33 = vpop.xlane.xlu0 %1445 }
 0x8ba   :  { %2192 = vrcp.f32 %v1446_v33 }
 0x8bc   :  { %v1315_v34 = vpop.permute.xlu1 %1314 }
 0x8bd   :  { %1321 = vst.msk [vmem:[#allocation2] sm:$0xff] %vm1320_vm4, %v1315_v34  ;;  %v1456_v35 = vpop.permute.xlu0 %1455 }
 0x8be   :  { %v1461_v36 = vsel %vm1082_vm6, %v1456_v35, 0 }
 0x8bf   :  { %2012 = vmatpush3.bf16.msra.mxu1 %v1461_v36 }
 0x8c0   :  { %v1317_v37 = vpop.permute.xlu1 %1316  ;;  %2017 = vmatprep.subr.bf16.mxu1 %v2281_v30 }
 0x8c1   :  { %1323 = vst.msk [vmem:[#allocation2 + $0x8] sm:$0xf] %vm1322_vm5, %v1317_v37 }
 0x8c3   :  { %v2191_v38 = vpop.eup %2190 }
 0x8c4   :  { %v2193_v39 = vpop.eup %2192  ;;  %v1453_v40 = vmul.f32 %v2191_v38, %v2187_v29  ;;  %v1894_v38 = vld [vmem:[#allocation7 + $0x41] ss:$0 sm:$0xff] }
 0x8c5   :  { %v1452_v12 = vmul.f32 %v2193_v39, %v2189_v4  ;;  %v824_v39 = vadd.f32 %v1894_v38, %v2409_v60 }
 0x8c7   :  { %v1454_v41 = vpack.c.bf16 %v1453_v40, %v1452_v12  ;;  %v1818_v40 = vmul.f32 %v1921_v26, %v824_v39 }
 0x8c9   :  { %2014 = vmatmul.mubr.msk.bf16.vlgmr.msra.gmra.mrb[32].mxu1 %vm1053_vm12, %v1454_v41  ;;  %v1896_v41 = vld [vmem:[#allocation7 + $0x43] ss:$0 sm:$0xff] }
 0x8ca   :  { %2021 = vmatprep.mubr.msk.bf16.mxu1 %vm2282_vm0, %v2281_v30  ;;  %2018 = vmatpush3.bf16.msra.mxu1 %v1528_v19  ;;  %v881_v43 = vadd.f32 %v1896_v41, %v2411_v0 }
 0x8cb   :  { %2019 = vmatprep.subr.bf16.mxu1 %v2281_v30 }
 0x8ce   :  { %2020 = vmatpush3.bf16.msra.mxu1 %v1537_v46 }
 0x8cf   :  { %2056 = vmatprep.subr.bf16.mxu1 %v2283_v59 }
 0x99c   :  { %v1497_v9 = vpop.f32.mrb[32].mxu1 }
 0x99d   :  { %1506 = vrot.lane.b32.xlu0 %v1497_v9, %s2286_s19  ;;  %v2015_v47 = vpop.f32.mrb[33].mxu1 }
 0x99e   :  { %v1500_v16 = vpop.f32.mrb[34].mxu1 }
 0x99f   :  { %1508 = vrot.lane.b32.xlu1 %v1500_v16, %s2286_s19  ;;  %v2016_v48 = vpop.f32.mrb[35].mxu1 }
 0xa0f   :  { %v1507_v15 = vpop.permute.xlu0 %1506 }
 0xa10   :  { %1513 = vst.msk [vmem:[#allocation2] sm:$0xff] %vm1512_vm10, %v1507_v15  ;;  %v1918_v15 = vld [vmem:[#allocation7 + $0x49] ss:$0 sm:$0xff] }
 0xa11   :  { %v1509_v49 = vpop.permute.xlu1 %1508 }
 0xa12   :  { %1515 = vst.msk [vmem:[#allocation2 + $0x8] sm:$0xf] %vm1514_vm11, %v1509_v49 }
 0xa17   :  { %v1516_v50 = vld [vmem:[#allocation2] sm:$0xff] }
 0xa18   :  { %v1523_v53 = vadd.f32 %v1912_v51, %v1516_v50 }
 0xa19   :  { %v1517_v52 = vld [vmem:[#allocation2 + $0x8] sm:$0xf] }
 0xa1a   :  { %v1524_v54 = vadd.f32 %v1912_v51, %v1517_v52 }
 0xa1c   :  { %v1530_v59 = vpack.c.bf16 %v1524_v54, %v1523_v53  ;;  %v1764_v54 = vld [vmem:[%s2575_s3] sm:$0x3] }
 0xa1e   :  { %2022 = vmatmul.mubr.msk.bf16.vlgmr.msra.gmra.mrb[36].mxu1 %vm1531_vm14, %v1530_v59 }
 0xa1f   :  { %2029 = vmatprep.mubr.msk.f32.mxu1 %vm2282_vm0, %v2281_v30 }
 0xaf1   :  { %v1573_v56 = vpop.f32.mrb[36].mxu1 }
 0xaf2   :  { %v1586_v57 = vmul.f32 %v1914_v55, %v1573_v56  ;;  %v2023_v58 = vpop.f32.mrb[37].mxu1 }
 0xaf3   :  { %v1576_v61 = vpop.f32.mrb[38].mxu1 }
 0xaf4   :  { %v1587_v62 = vmul.f32 %v1914_v55, %v1576_v61  ;;  %v2057_v63 = vpack.c.bf16 %v1576_v61, %v1573_v56  ;;  %v2024_v11 = vpop.f32.mrb[39].mxu1  ;;  %v1588_v1 = vsel %vm895_vm3, %v1586_v57, 0.0  ;;  %v1765_v56 = vpack.c.bf16 %v1764_v54, %v1764_v54 }
 0xaf5   :  { %1589 = vadd.xlane.f32.xlu0 %v1588_v1 }
 0xaf6   :  { %2059 = vmatpush3.bf16.xpose.msk.msra.mxu1 %vm2058_vm15, %v2057_v63  ;;  %v1592_v2 = vsel %vm1591_vm1, %v1587_v62, 0.0  ;;  %v1721_v5 = vsel %vm1082_vm6, %v2057_v63, 0 }
 0xaf7   :  { %1593 = vadd.xlane.f32.xlu1 %v1592_v2  ;;  %2032 = vmatprep.subr.bf16.mxu1 %v2281_v30 }
 0xafd   :  { %2030 = vmatmul.mubr.msk.f32.vlgmr.msra.gmra.mrb[40].mxu1 %vm895_vm3, %v1580_v3  ;;  %vm1819_vm3 = vcmask 254976  }
 0xafe   :  { %2033 = vmatpush3.bf16.msra.mxu1 %v1721_v5  ;;  %2034 = vmatprep.mubr.msk.bf16.mxu1 %vm2282_vm0, %v2281_v30  ;;  %v1820_v12 = vsel %vm1819_vm3, %v1818_v40, 0.0  ;;  %v1922_v5 = vld [vmem:[#allocation7 + $0x4b] ss:$0 sm:$0xff] }
 0xaff   :  { %2038 = vmatprep.subr.bf16.mxu1 %v2281_v30 }
 0xb82   :  { %v1590_v13 = vpop.xlane.xlu0 %1589 }
 0xb84   :  { %v1594_v14 = vpop.xlane.xlu1 %1593 }
 0xbd0   :  { %v1670_v6 = vpop.f32.mrb[40].mxu1 }
 0xbd1   :  { %v1677_v8 = vrot.slane %v1670_v6, %v2442_v21  ;;  %v2031_v10 = vpop.f32.mrb[41].mxu1 }
 0xbd3   :  { %v1678_v17 = vadd.f32 %v1677_v8, %v1590_v13  ;;  %v1679_v18 = vadd.f32 %v1677_v8, %v1594_v14 }
 0xbd5   :  { %vm1680_vm2 = vcmp.ge.f32.partialorder %v1678_v17, 0.0  ;;  %v1682_v20 = vmul.f32 0.2, %v1678_v17  ;;  %vm1681_vm4 = vcmp.ge.f32.partialorder %v1679_v18, 0.0  ;;  %v1683_v22 = vmul.f32 0.2, %v1679_v18 }
 0xbd7   :  { %v1684_v23 = vsel %vm1680_vm2, %v1678_v17, %v1682_v20  ;;  %v1685_v24 = vsel %vm1681_vm4, %v1679_v18, %v1683_v22 }
 0xbd8   :  { %v1686_v27 = vsel %vm890_vm8, %v1684_v23, -1e+30  ;;  %v1687_v21 = vsel %vm891_vm9, %v1685_v24, -1e+30 }
 0xbd9   :  { %v1688_v28 = vsel %vm1053_vm12, %v1686_v27, -inf  ;;  %v1691_v29 = vsel %vm1057_vm13, %v1687_v21, -inf }
 0xbda   :  { %1689 = vmax.xlane.f32.xlu0 %v1688_v28 }
 0xbde   :  { %1692 = vmax.xlane.f32.xlu0 %v1691_v29 }
 0xc67   :  { %v1690_v4 = vpop.xlane.xlu0 %1689 }
 0xc68   :  { %v1694_v7 = vsub.f32 %v1686_v27, %v1690_v4 }
 0xc6a   :  { %v1696_v31 = vmul.f32 1.442695, %v1694_v7 }
 0xc6b   :  { %v1693_v32 = vpop.xlane.xlu0 %1692 }
 0xc6c   :  { %2194 = vpow2.f32 %v1696_v31  ;;  %v1695_v33 = vsub.f32 %v1687_v21, %v1693_v32 }
 0xc6e   :  { %v1698_v34 = vmul.f32 1.442695, %v1695_v33 }
 0xc70   :  { %2196 = vpow2.f32 %v1698_v34 }
 0xc76   :  { %v2195_v35 = vpop.eup %2194 }
 0xc77   :  { %v1700_v25 = vsel %vm1053_vm12, %v2195_v35, 0.0 }
 0xc78   :  { %1701 = vadd.xlane.f32.xlu1 %v1700_v25 }
 0xc7a   :  { %v2197_v36 = vpop.eup %2196 }
 0xc7b   :  { %v1703_v37 = vsel %vm1057_vm13, %v2197_v36, 0.0 }
 0xc7c   :  { %1704 = vadd.xlane.f32.xlu0 %v1703_v37 }
 0xc89   :  { %1824 = vrot.lane.b32.xlu1 %v1921_v26, %s2280_s5 }
 0xc92   :  { %1832 = vrot.lane.b32.xlu0 %v1921_v26, %s2287_s20 }
 0xcad   :  { %1821 = vadd.xlane.f32.xlu1 %v1820_v12 }
 0xd05   :  { %v1702_v42 = vpop.xlane.xlu1 %1701 }
 0xd06   :  { %2198 = vrcp.f32 %v1702_v42 }
 0xd09   :  { %v1825_v44 = vpop.permute.xlu1 %1824  ;;  %v1705_v19 = vpop.xlane.xlu0 %1704 }
 0xd0a   :  { %v1827_v45 = vmul.f32 %v1825_v44, %v881_v43  ;;  %2200 = vrcp.f32 %v1705_v19 }
 0xd0c   :  { %v1828_v46 = vsel %vm1819_vm3, %v1827_v45, 0.0 }
 0xd0d   :  { %1829 = vadd.xlane.f32.xlu0 %v1828_v46  ;;  %v1833_v57 = vpop.permute.xlu0 %1832 }
 0xd10   :  { %v2199_v9 = vpop.eup %2198 }
 0xd11   :  { %v1708_v16 = vmul.f32 %v2199_v9, %v2195_v35 }
 0xd14   :  { %v2201_v47 = vpop.eup %2200 }
 0xd15   :  { %v1709_v48 = vmul.f32 %v2201_v47, %v2197_v36 }
 0xd17   :  { %v1710_v60 = vpack.c.bf16 %v1709_v48, %v1708_v16 }
 0xd19   :  { %2035 = vmatmul.mubr.msk.bf16.vlgmr.msra.gmra.mrb[44].mxu1 %vm1053_vm12, %v1710_v60 }
 0xd1a   :  { %2040 = vmatprep.mubr.msk.bf16.mxu1 %vm2282_vm0, %v2281_v30  ;;  %vm1836_vm0 = vcmask 41984  }
 0xd3a   :  { %v1822_v1 = vpop.xlane.xlu1 %1821 }
 0xd9a   :  { %v1830_v2 = vpop.xlane.xlu0 %1829 }
 0xd9b   :  { %v1831_v3 = vadd.f32 %v1830_v2, %v1822_v1 }
 0xdec   :  { %v1757_v49 = vpop.f32.mrb[44].mxu1 }
 0xded   :  { %v2036_v0 = vpop.f32.mrb[45].mxu1  ;;  %v1758_v51 = vadd.f32 %v1918_v15, %v1757_v49 }
 0xdee   :  { %v1760_v50 = vpop.f32.mrb[46].mxu1 }
 0xdef   :  { %v1761_v52 = vadd.f32 %v1918_v15, %v1760_v50  ;;  %v2037_v53 = vpop.f32.mrb[47].mxu1 }
 0xdf1   :  { %v1766_v59 = vpack.c.bf16 %v1761_v52, %v1758_v51 }
 0xdf3   :  { %v1771_v55 = vsel %vm1082_vm6, %v1766_v59, 0  ;;  %vm1847_vm6 = vcmask 1024  }
 0xdf4   :  { %2039 = vmatpush3.bf16.msra.mxu1 %v1771_v55 }
 0xdf7   :  { %2041 = vmatmul.mubr.msk.bf16.vlgmr.msra.gmra.mrb[48].mxu1 %vm1053_vm12, %v1765_v56 }
 0xeca   :  { %v1807_v30 = vpop.f32.mrb[48].mxu1 }
 0xecb   :  { %v1835_v58 = vmul.f32 %v1833_v57, %v1807_v30  ;;  %v2042_v61 = vpop.f32.mrb[49].mxu1 }
 0xecc   :  { %v1810_v62 = vpop.f32.mrb[50].mxu1 }
 0xecd   :  { %v1837_v63 = vsel %vm1836_vm0, %v1835_v58, 0.0  ;;  %v2043_v11 = vpop.f32.mrb[51].mxu1 }
 0xece   :  { %1838 = vadd.xlane.f32.xlu1 %v1837_v63 }
 0xf5b   :  { %v1839_v6 = vpop.xlane.xlu1 %1838 }
 0xf5c   :  { %v1840_v8 = vadd.f32 %v1839_v6, %v1831_v3 }
 0xf5e   :  { %v1846_v10 = vadd.f32 %v1922_v5, %v1840_v8 }
 0xf60   :  { %1848 = vst.msk [vmem:[%s2578_s6] sm:$0x3] %vm1847_vm6, %v1846_v10 }
 0xf61   :  { %1853 = vsyncpa [#allocation4], 1 }
 0xf62   :  { %1854 = vsyncpa [#allocation6], 1 }

</bundles_post_ra>
